<compile_context>
chip_gen: v5e
topology: v5e:2x2
jax: 0.10.0
libtpu: 0.0.40
codegen_flags: <defaults>
</compile_context>

<pallas_src>
import math
import numpy as np

import jax
import jax.numpy as jnp
from jax.experimental import pallas as pl
from jax.experimental.pallas import tpu as pltpu

# ---- model / problem sizes (small, consistent with the module defaults) ----
N_LAYERS = 6          # global N in the reference code
HEADS = 4
D_MODEL = 32
DK = D_MODEL // HEADS
D_FF = 2048           # FeedForward default d_ff
VOCAB = 50
MAX_SEQ = 80          # PositionalEncoder default max_seq_len
BATCH = 2
SEQ = 8
M = BATCH * SEQ
EPS = 1e-6
ATTN_SCALE = 1.0 / math.sqrt(DK)
PREC = jax.lax.Precision.HIGHEST   # used by the pure-JAX reference only


# ----------------------------- shared math ---------------------------------

def _norm(x, alpha, beta):
    """torch Norm: alpha * (x - mean) / (std + eps) + bias  (std is unbiased)."""
    d = x.shape[-1]
    mean = jnp.mean(x, axis=-1, keepdims=True)
    cen = x - mean
    var = jnp.sum(cen * cen, axis=-1, keepdims=True) / (d - 1)
    return alpha * cen / (jnp.sqrt(var) + EPS) + beta


# ------------------------------ Pallas kernel -------------------------------

def encoder_kernel(x_ref, bias_ref,
                   ln1a_ref, ln1b_ref, wqkv_ref, bqkv_ref, wo_ref, bo_ref,
                   ln2a_ref, ln2b_ref, w1_ref, b1_ref, w2_ref, b2_ref,
                   fna_ref, fnb_ref,
                   out_ref, x_scr):
    layer = pl.program_id(0)
    n_layers = pl.num_programs(0)

    # First grid step: load the embedded+PE activations into the carried scratch.
    @pl.when(layer == 0)
    def _():
        x_scr[...] = x_ref[...]

    x = x_scr[...]                       # (M, D) f32, carried across layers
    bias = bias_ref[...]                 # (B, 1, S) additive mask bias

    # ---- multi-head self-attention sublayer ----
    x2 = _norm(x, ln1a_ref[...], ln1b_ref[...])
    # fused QKV projection: one (M,32)@(32,96) bf16 matmul, f32 accumulate.
    qkv = jnp.dot(x2.astype(jnp.bfloat16), wqkv_ref[...],
                  preferred_element_type=jnp.float32) + bqkv_ref[...]
    qkv3 = qkv.reshape(BATCH, SEQ, 3 * D_MODEL)

    head_outs = []
    for h in range(HEADS):
        qh = qkv3[..., h * DK:(h + 1) * DK]                            # scale folded into Wq
        kh = qkv3[..., D_MODEL + h * DK:D_MODEL + (h + 1) * DK]
        vh = qkv3[..., 2 * D_MODEL + h * DK:2 * D_MODEL + (h + 1) * DK]
        sc = jnp.einsum("bqd,bkd->bqk", qh, kh,
                        preferred_element_type=jnp.float32) + bias      # (B,S,S)
        sc = sc - jnp.max(sc, axis=-1, keepdims=True)                   # stable softmax
        e = jnp.exp(sc)
        p = e * pl.reciprocal(jnp.sum(e, axis=-1, keepdims=True), approx=True)
        oh = jnp.einsum("bqk,bkd->bqd", p, vh,
                        preferred_element_type=jnp.float32)
        head_outs.append(oh)
    concat = jnp.concatenate(head_outs, axis=-1).reshape(M, D_MODEL)    # (M, D)
    # single output projection against the full Wo
    attn = jnp.dot(concat.astype(jnp.bfloat16), wo_ref[...],
                   preferred_element_type=jnp.float32) + bo_ref[...]
    x = x + attn

    # ---- feed-forward sublayer (single un-chunked pass over d_ff) ----
    x2 = _norm(x, ln2a_ref[...], ln2b_ref[...]).astype(jnp.bfloat16)
    h1 = jnp.dot(x2, w1_ref[...],
                 preferred_element_type=jnp.float32) + b1_ref[...]      # (M, d_ff) f32
    h1 = jnp.maximum(h1, 0.0)                                           # ReLU
    ff = jnp.dot(h1.astype(jnp.bfloat16), w2_ref[...],
                 preferred_element_type=jnp.float32) + b2_ref[...]
    x = x + ff
    x_scr[...] = x

    # Last grid step: apply the final Norm and emit the output block.
    @pl.when(layer == n_layers - 1)
    def _():
        out_ref[...] = _norm(x, fna_ref[...], fnb_ref[...])


def _layer_spec(per_layer_shape):
    """BlockSpec selecting one layer's slab out of a (N_LAYERS, ...) stack."""
    ndim = len(per_layer_shape) + 1
    return pl.BlockSpec((None,) + tuple(per_layer_shape),
                        lambda l: (l,) + (0,) * (ndim - 1))


@jax.jit
def encoder_pallas(src, mask, emb_table, pe, params):
    # glue: embedding gather + scaling + positional encoding (plain JAX)
    b, s = src.shape
    x = (emb_table[src] * math.sqrt(D_MODEL) + pe[None, :s, :]).astype(jnp.float32)
    x2d = x.reshape(M, D_MODEL)
    # additive mask bias: 0 where attend, -1e9 where masked
    bias = (mask.astype(jnp.float32) - 1.0) * 1e9

    bf16 = jnp.bfloat16
    # fuse QKV weights/biases, fold 1/sqrt(d_k) into the Q half, cast to bf16
    wqkv = jnp.concatenate(
        [params["wq"] * ATTN_SCALE, params["wk"], params["wv"]], axis=-1).astype(bf16)
    bqkv = jnp.concatenate(
        [params["bq"] * ATTN_SCALE, params["bk"], params["bv"]], axis=-1)

    inputs = [
        x2d, bias,
        params["ln1a"], params["ln1b"], wqkv, bqkv,
        params["wo"].astype(bf16), params["bo"],
        params["ln2a"], params["ln2b"],
        params["w1"].astype(bf16), params["b1"],
        params["w2"].astype(bf16), params["b2"],
        params["fna"], params["fnb"],
    ]

    in_specs = [
        pl.BlockSpec((M, D_MODEL), lambda l: (0, 0)),               # x (fetched once)
        pl.BlockSpec((BATCH, 1, SEQ), lambda l: (0, 0, 0)),         # mask bias
        _layer_spec((1, D_MODEL)),                                  # ln1a
        _layer_spec((1, D_MODEL)),                                  # ln1b
        _layer_spec((D_MODEL, 3 * D_MODEL)),                        # wqkv
        _layer_spec((1, 3 * D_MODEL)),                              # bqkv
        _layer_spec((D_MODEL, D_MODEL)),                            # wo
        _layer_spec((1, D_MODEL)),                                  # bo
        _layer_spec((1, D_MODEL)),                                  # ln2a
        _layer_spec((1, D_MODEL)),                                  # ln2b
        _layer_spec((D_MODEL, D_FF)),                               # w1
        _layer_spec((1, D_FF)),                                     # b1
        _layer_spec((D_FF, D_MODEL)),                               # w2
        _layer_spec((1, D_MODEL)),                                  # b2
        pl.BlockSpec((1, D_MODEL), lambda l: (0, 0)),               # final norm alpha
        pl.BlockSpec((1, D_MODEL), lambda l: (0, 0)),               # final norm bias
    ]

    out2d = pl.pallas_call(
        encoder_kernel,
        out_shape=jax.ShapeDtypeStruct((M, D_MODEL), jnp.float32),
        grid_spec=pltpu.PrefetchScalarGridSpec(
            num_scalar_prefetch=0,
            grid=(N_LAYERS,),
            in_specs=in_specs,
            out_specs=pl.BlockSpec((M, D_MODEL), lambda l: (0, 0)),
            scratch_shapes=[pltpu.VMEM((M, D_MODEL), jnp.float32)],
        ),
        compiler_params=pltpu.CompilerParams(
            dimension_semantics=("arbitrary",)),
    )(*inputs)
    return out2d.reshape(BATCH, SEQ, D_MODEL)


# ------------------------- pure-JAX f32 reference ----------------------------

def _ref_mha(x2, mask, wq, bq, wk, bk, wv, bv, wo, bo):
    b, s, _ = x2.shape
    q = jnp.dot(x2, wq, precision=PREC) + bq
    k = jnp.dot(x2, wk, precision=PREC) + bk
    v = jnp.dot(x2, wv, precision=PREC) + bv

    def split(t):   # (B,S,D) -> (B,H,S,dk)
        return t.reshape(b, s, HEADS, DK).transpose(0, 2, 1, 3)

    qh, kh, vh = split(q), split(k), split(v)
    sc = jnp.einsum("bhqd,bhkd->bhqk", qh, kh, precision=PREC) / math.sqrt(DK)
    sc = jnp.where(mask[:, None, :, :] == 0.0, -1e9, sc)   # torch masked_fill
    p = jax.nn.softmax(sc, axis=-1)
    o = jnp.einsum("bhqk,bhkd->bhqd", p, vh, precision=PREC)
    o = o.transpose(0, 2, 1, 3).reshape(b, s, D_MODEL)
    return jnp.dot(o, wo, precision=PREC) + bo


@jax.jit
def encoder_reference(src, mask, emb_table, pe, params):
    x = emb_table[src] * math.sqrt(D_MODEL) + pe[None, :src.shape[1], :]
    for l in range(N_LAYERS):
        x2 = _norm(x, params["ln1a"][l], params["ln1b"][l])
        x = x + _ref_mha(x2, mask,
                         params["wq"][l], params["bq"][l],
                         params["wk"][l], params["bk"][l],
                         params["wv"][l], params["bv"][l],
                         params["wo"][l], params["bo"][l])
        x2 = _norm(x, params["ln2a"][l], params["ln2b"][l])
        h = jax.nn.relu(jnp.dot(x2, params["w1"][l], precision=PREC) + params["b1"][l])
        x = x + jnp.dot(h, params["w2"][l], precision=PREC) + params["b2"][l]
    return _norm(x, params["fna"], params["fnb"])


# ----------------------------------- main -----------------------------------

def _build_pe():
    """Exactly reproduce the (quirky) torch PositionalEncoder buffer."""
    pe = np.zeros((MAX_SEQ, D_MODEL), dtype=np.float32)
    for pos in range(MAX_SEQ):
        for i in range(0, D_MODEL, 2):
            pe[pos, i] = math.sin(pos / 10000 ** (2 * i / D_MODEL))
            pe[pos, i + 1] = math.cos(pos / 10000 ** (2 * (i + 1) / D_MODEL))
    return jnp.asarray(pe)


if __name__ == "__main__":
    key = jax.random.PRNGKey(0)
    keys = iter(jax.random.split(key, 64))

    def nrm(shape, scale=0.05):
        return scale * jax.random.normal(next(keys), shape, jnp.float32)

    emb_table = nrm((VOCAB, D_MODEL), 1.0)
    pe = _build_pe()

    params = {
        "ln1a": 1.0 + nrm((N_LAYERS, 1, D_MODEL)),
        "ln1b": nrm((N_LAYERS, 1, D_MODEL)),
        "ln2a": 1.0 + nrm((N_LAYERS, 1, D_MODEL)),
        "ln2b": nrm((N_LAYERS, 1, D_MODEL)),
        "wq": nrm((N_LAYERS, D_MODEL, D_MODEL)),
        "bq": nrm((N_LAYERS, 1, D_MODEL), 0.02),
        "wk": nrm((N_LAYERS, D_MODEL, D_MODEL)),
        "bk": nrm((N_LAYERS, 1, D_MODEL), 0.02),
        "wv": nrm((N_LAYERS, D_MODEL, D_MODEL)),
        "bv": nrm((N_LAYERS, 1, D_MODEL), 0.02),
        "wo": nrm((N_LAYERS, D_MODEL, D_MODEL)),
        "bo": nrm((N_LAYERS, 1, D_MODEL), 0.02),
        "w1": nrm((N_LAYERS, D_MODEL, D_FF)),
        "b1": nrm((N_LAYERS, 1, D_FF), 0.02),
        "w2": nrm((N_LAYERS, D_FF, D_MODEL), 0.02),
        "b2": nrm((N_LAYERS, 1, D_MODEL), 0.02),
        "fna": 1.0 + nrm((1, D_MODEL)),
        "fnb": nrm((1, D_MODEL)),
    }

    src = jax.random.randint(next(keys), (BATCH, SEQ), 0, VOCAB, jnp.int32)
    # mask: 1 = attend, 0 = masked (last two keys of batch 1 masked out)
    mask = jnp.ones((BATCH, 1, SEQ), jnp.float32).at[1, 0, SEQ - 2:].set(0.0)

    out = jax.block_until_ready(encoder_pallas(src, mask, emb_table, pe, params))
    ref = jax.block_until_ready(encoder_reference(src, mask, emb_table, pe, params))

    assert out.shape == (BATCH, SEQ, D_MODEL), out.shape
    err = float(jnp.max(jnp.abs(out - ref)))
    assert err < 5e-2, f"max abs err too large: {err}"
    print("KERNEL_OK")
</pallas_src>

<mosaic_0001>
module attributes {stable_mosaic.version = 11 : i64} {
  func.func @encoder_kernel(%arg0: i32, %arg1: memref<16x32xf32, #tpu.memory_space<vmem>>, %arg2: memref<2x1x8xf32, #tpu.memory_space<vmem>>, %arg3: memref<1x1x32xf32, #tpu.memory_space<vmem>>, %arg4: memref<1x1x32xf32, #tpu.memory_space<vmem>>, %arg5: memref<1x32x96xbf16, #tpu.memory_space<vmem>>, %arg6: memref<1x1x96xf32, #tpu.memory_space<vmem>>, %arg7: memref<1x32x32xbf16, #tpu.memory_space<vmem>>, %arg8: memref<1x1x32xf32, #tpu.memory_space<vmem>>, %arg9: memref<1x1x32xf32, #tpu.memory_space<vmem>>, %arg10: memref<1x1x32xf32, #tpu.memory_space<vmem>>, %arg11: memref<1x32x2048xbf16, #tpu.memory_space<vmem>>, %arg12: memref<1x1x2048xf32, #tpu.memory_space<vmem>>, %arg13: memref<1x2048x32xbf16, #tpu.memory_space<vmem>>, %arg14: memref<1x1x32xf32, #tpu.memory_space<vmem>>, %arg15: memref<1x32xf32, #tpu.memory_space<vmem>>, %arg16: memref<1x32xf32, #tpu.memory_space<vmem>>, %arg17: memref<16x32xf32, #tpu.memory_space<vmem>>, %arg18: memref<16x32xf32, #tpu.memory_space<vmem>>) attributes {dimension_semantics = [#tpu.dimension_semantics<arbitrary>], iteration_bounds = array<i64: 6>, scalar_prefetch = 0 : i64, scratch_operands = 1 : i64, tpu.core_type = #tpu.core_type<tc>, window_params = [{pipeline_mode = #tpu.pipeline_mode<synchronous>, transform_indices = @transform_0, window_bounds = array<i64: 16, 32>}, {pipeline_mode = #tpu.pipeline_mode<synchronous>, transform_indices = @transform_1, window_bounds = array<i64: 2, 1, 8>}, {transform_indices = @transform_2, window_bounds = array<i64: 1, 1, 32>}, {transform_indices = @transform_3, window_bounds = array<i64: 1, 1, 32>}, {transform_indices = @transform_4, window_bounds = array<i64: 1, 32, 96>}, {transform_indices = @transform_5, window_bounds = array<i64: 1, 1, 96>}, {transform_indices = @transform_6, window_bounds = array<i64: 1, 32, 32>}, {transform_indices = @transform_7, window_bounds = array<i64: 1, 1, 32>}, {transform_indices = @transform_8, window_bounds = array<i64: 1, 1, 32>}, {transform_indices = @transform_9, window_bounds = array<i64: 1, 1, 32>}, {transform_indices = @transform_10, window_bounds = array<i64: 1, 32, 2048>}, {transform_indices = @transform_11, window_bounds = array<i64: 1, 1, 2048>}, {transform_indices = @transform_12, window_bounds = array<i64: 1, 2048, 32>}, {transform_indices = @transform_13, window_bounds = array<i64: 1, 1, 32>}, {pipeline_mode = #tpu.pipeline_mode<synchronous>, transform_indices = @transform_14, window_bounds = array<i64: 1, 32>}, {pipeline_mode = #tpu.pipeline_mode<synchronous>, transform_indices = @transform_15, window_bounds = array<i64: 1, 32>}, {pipeline_mode = #tpu.pipeline_mode<synchronous>, transform_indices = @transform_16, window_bounds = array<i64: 16, 32>}]} {
    %c0_i32 = arith.constant 0 : i32
    %0 = arith.cmpi eq, %arg0, %c0_i32 : i32
    %1 = arith.extui %0 : i1 to i32
    %c0_i32_0 = arith.constant 0 : i32
    %2 = arith.cmpi ne, %1, %c0_i32_0 : i32
    scf.if %2 {
      %c0_74 = arith.constant 0 : index
      %c0_75 = arith.constant 0 : index
      %164 = vector.load %arg1[%c0_74, %c0_75] : memref<16x32xf32, #tpu.memory_space<vmem>>, vector<16x32xf32>
      %c0_76 = arith.constant 0 : index
      %c0_77 = arith.constant 0 : index
      %165 = vector.load %arg18[%c0_76, %c0_77] : memref<16x32xf32, #tpu.memory_space<vmem>>, vector<16x32xf32>
      tpu.vector_store %arg18[%c0_76, %c0_77], %164 {strides = array<i32>} : memref<16x32xf32, #tpu.memory_space<vmem>>, vector<16x32xf32>,
    } else {
    }
    %c0 = arith.constant 0 : index
    %c0_1 = arith.constant 0 : index
    %3 = vector.load %arg18[%c0, %c0_1] : memref<16x32xf32, #tpu.memory_space<vmem>>, vector<16x32xf32>
    %c0_2 = arith.constant 0 : index
    %c0_3 = arith.constant 0 : index
    %c0_4 = arith.constant 0 : index
    %4 = vector.load %arg2[%c0_2, %c0_3, %c0_4] : memref<2x1x8xf32, #tpu.memory_space<vmem>>, vector<2x1x8xf32>
    %c0_5 = arith.constant 0 : index
    %c0_6 = arith.constant 0 : index
    %c0_7 = arith.constant 0 : index
    %5 = vector.load %arg3[%c0_5, %c0_6, %c0_7] : memref<1x1x32xf32, #tpu.memory_space<vmem>>, vector<1x1x32xf32>
    %6 = vector.shape_cast %5 : vector<1x1x32xf32> to vector<1x32xf32>
    %c0_8 = arith.constant 0 : index
    %c0_9 = arith.constant 0 : index
    %c0_10 = arith.constant 0 : index
    %7 = vector.load %arg4[%c0_8, %c0_9, %c0_10] : memref<1x1x32xf32, #tpu.memory_space<vmem>>, vector<1x1x32xf32>
    %8 = vector.shape_cast %7 : vector<1x1x32xf32> to vector<1x32xf32>
    %cst = arith.constant dense<0.000000e+00> : vector<16xf32>
    %9 = vector.multi_reduction <add>, %3, %cst [1] : vector<16x32xf32> to vector<16xf32>
    %10 = vector.shape_cast %9 : vector<16xf32> to vector<16x1xf32>
    %cst_11 = arith.constant 3.200000e+01 : f32
    %11 = vector.broadcast %cst_11 : f32 to vector<16x1xf32>
    %12 = arith.divf %10, %11 : vector<16x1xf32>
    %13 = vector.broadcast %12 : vector<16x1xf32> to vector<16x32xf32>
    %14 = arith.subf %3, %13 : vector<16x32xf32>
    %15 = arith.mulf %14, %14 : vector<16x32xf32>
    %cst_12 = arith.constant dense<0.000000e+00> : vector<16xf32>
    %16 = vector.multi_reduction <add>, %15, %cst_12 [1] : vector<16x32xf32> to vector<16xf32>
    %17 = vector.shape_cast %16 : vector<16xf32> to vector<16x1xf32>
    %cst_13 = arith.constant 3.100000e+01 : f32
    %18 = vector.broadcast %cst_13 : f32 to vector<16x1xf32>
    %19 = arith.divf %17, %18 : vector<16x1xf32>
    %20 = vector.broadcast %6 : vector<1x32xf32> to vector<16x32xf32>
    %21 = arith.mulf %20, %14 : vector<16x32xf32>
    %22 = math.sqrt %19 : vector<16x1xf32>
    %cst_14 = arith.constant 9.99999997E-7 : f32
    %23 = vector.broadcast %cst_14 : f32 to vector<16x1xf32>
    %24 = arith.addf %22, %23 : vector<16x1xf32>
    %25 = vector.broadcast %24 : vector<16x1xf32> to vector<16x32xf32>
    %26 = arith.divf %21, %25 : vector<16x32xf32>
    %27 = vector.broadcast %8 : vector<1x32xf32> to vector<16x32xf32>
    %28 = arith.addf %26, %27 : vector<16x32xf32>
    %29 = arith.truncf %28 : vector<16x32xf32> to vector<16x32xbf16>
    %c0_15 = arith.constant 0 : index
    %c0_16 = arith.constant 0 : index
    %c0_17 = arith.constant 0 : index
    %30 = vector.load %arg5[%c0_15, %c0_16, %c0_17] : memref<1x32x96xbf16, #tpu.memory_space<vmem>>, vector<1x32x96xbf16>
    %31 = vector.shape_cast %30 : vector<1x32x96xbf16> to vector<32x96xbf16>
    %cst_18 = arith.constant dense<0.000000e+00> : vector<16x96xf32>
    %32 = tpu.matmul %29, %31, %cst_18 {dimension_numbers = #tpu.dot_dimension_numbers<[1], [0], [0], [1], [0, 0, 1, 1], [], []>} : vector<16x32xbf16>, vector<32x96xbf16>, vector<16x96xf32> -> vector<16x96xf32>
    %c0_19 = arith.constant 0 : index
    %c0_20 = arith.constant 0 : index
    %c0_21 = arith.constant 0 : index
    %33 = vector.load %arg6[%c0_19, %c0_20, %c0_21] : memref<1x1x96xf32, #tpu.memory_space<vmem>>, vector<1x1x96xf32>
    %34 = vector.shape_cast %33 : vector<1x1x96xf32> to vector<1x96xf32>
    %35 = vector.broadcast %34 : vector<1x96xf32> to vector<16x96xf32>
    %36 = arith.addf %32, %35 : vector<16x96xf32>
    %37 = vector.shape_cast %36 : vector<16x96xf32> to vector<2x8x96xf32>
    %38 = vector.extract_strided_slice %37 {offsets = [0, 0, 0], sizes = [2, 8, 8], strides = [1, 1, 1]} : vector<2x8x96xf32> to vector<2x8x8xf32>
    %39 = vector.extract_strided_slice %37 {offsets = [0, 0, 32], sizes = [2, 8, 8], strides = [1, 1, 1]} : vector<2x8x96xf32> to vector<2x8x8xf32>
    %40 = vector.extract_strided_slice %37 {offsets = [0, 0, 64], sizes = [2, 8, 8], strides = [1, 1, 1]} : vector<2x8x96xf32> to vector<2x8x8xf32>
    "tpu.trace_start"() <{level = 10 : i32, message = "bqd,bkd->bqk"}> : () -> ()
    %cst_22 = arith.constant dense<0.000000e+00> : vector<2x8x8xf32>
    %41 = tpu.matmul %38, %39, %cst_22 {dimension_numbers = #tpu.dot_dimension_numbers<[2], [2], [1], [1], [0, 0, 0, 1, 1, 1], [0], [0]>} : vector<2x8x8xf32>, vector<2x8x8xf32>, vector<2x8x8xf32> -> vector<2x8x8xf32>
    "tpu.trace_stop"() : () -> ()
    %42 = vector.broadcast %4 : vector<2x1x8xf32> to vector<2x8x8xf32>
    %43 = arith.addf %41, %42 : vector<2x8x8xf32>
    %cst_23 = arith.constant dense<0xFF800000> : vector<2x8xf32>
    %44 = vector.multi_reduction <maximumf>, %43, %cst_23 [2] : vector<2x8x8xf32> to vector<2x8xf32>
    %45 = vector.shape_cast %44 : vector<2x8xf32> to vector<2x8x1xf32>
    %46 = vector.broadcast %45 : vector<2x8x1xf32> to vector<2x8x8xf32>
    %47 = arith.subf %43, %46 : vector<2x8x8xf32>
    %48 = math.exp %47 : vector<2x8x8xf32>
    %cst_24 = arith.constant dense<0.000000e+00> : vector<2x8xf32>
    %49 = vector.multi_reduction <add>, %48, %cst_24 [2] : vector<2x8x8xf32> to vector<2x8xf32>
    %50 = vector.shape_cast %49 : vector<2x8xf32> to vector<2x8x1xf32>
    %51 = tpu.reciprocal %50 {approx = true} : vector<2x8x1xf32> -> vector<2x8x1xf32>
    %52 = vector.broadcast %51 : vector<2x8x1xf32> to vector<2x8x8xf32>
    %53 = arith.mulf %48, %52 : vector<2x8x8xf32>
    "tpu.trace_start"() <{level = 10 : i32, message = "bqk,bkd->bqd"}> : () -> ()
    %cst_25 = arith.constant dense<0.000000e+00> : vector<2x8x8xf32>
    %54 = tpu.matmul %53, %40, %cst_25 {dimension_numbers = #tpu.dot_dimension_numbers<[2], [1], [1], [2], [0, 0, 0, 1, 1, 2], [0], [0]>} : vector<2x8x8xf32>, vector<2x8x8xf32>, vector<2x8x8xf32> -> vector<2x8x8xf32>
    "tpu.trace_stop"() : () -> ()
    %55 = vector.extract_strided_slice %37 {offsets = [0, 0, 8], sizes = [2, 8, 8], strides = [1, 1, 1]} : vector<2x8x96xf32> to vector<2x8x8xf32>
    %56 = vector.extract_strided_slice %37 {offsets = [0, 0, 40], sizes = [2, 8, 8], strides = [1, 1, 1]} : vector<2x8x96xf32> to vector<2x8x8xf32>
    %57 = vector.extract_strided_slice %37 {offsets = [0, 0, 72], sizes = [2, 8, 8], strides = [1, 1, 1]} : vector<2x8x96xf32> to vector<2x8x8xf32>
    "tpu.trace_start"() <{level = 10 : i32, message = "bqd,bkd->bqk"}> : () -> ()
    %cst_26 = arith.constant dense<0.000000e+00> : vector<2x8x8xf32>
    %58 = tpu.matmul %55, %56, %cst_26 {dimension_numbers = #tpu.dot_dimension_numbers<[2], [2], [1], [1], [0, 0, 0, 1, 1, 1], [0], [0]>} : vector<2x8x8xf32>, vector<2x8x8xf32>, vector<2x8x8xf32> -> vector<2x8x8xf32>
    "tpu.trace_stop"() : () -> ()
    %59 = vector.broadcast %4 : vector<2x1x8xf32> to vector<2x8x8xf32>
    %60 = arith.addf %58, %59 : vector<2x8x8xf32>
    %cst_27 = arith.constant dense<0xFF800000> : vector<2x8xf32>
    %61 = vector.multi_reduction <maximumf>, %60, %cst_27 [2] : vector<2x8x8xf32> to vector<2x8xf32>
    %62 = vector.shape_cast %61 : vector<2x8xf32> to vector<2x8x1xf32>
    %63 = vector.broadcast %62 : vector<2x8x1xf32> to vector<2x8x8xf32>
    %64 = arith.subf %60, %63 : vector<2x8x8xf32>
    %65 = math.exp %64 : vector<2x8x8xf32>
    %cst_28 = arith.constant dense<0.000000e+00> : vector<2x8xf32>
    %66 = vector.multi_reduction <add>, %65, %cst_28 [2] : vector<2x8x8xf32> to vector<2x8xf32>
    %67 = vector.shape_cast %66 : vector<2x8xf32> to vector<2x8x1xf32>
    %68 = tpu.reciprocal %67 {approx = true} : vector<2x8x1xf32> -> vector<2x8x1xf32>
    %69 = vector.broadcast %68 : vector<2x8x1xf32> to vector<2x8x8xf32>
    %70 = arith.mulf %65, %69 : vector<2x8x8xf32>
    "tpu.trace_start"() <{level = 10 : i32, message = "bqk,bkd->bqd"}> : () -> ()
    %cst_29 = arith.constant dense<0.000000e+00> : vector<2x8x8xf32>
    %71 = tpu.matmul %70, %57, %cst_29 {dimension_numbers = #tpu.dot_dimension_numbers<[2], [1], [1], [2], [0, 0, 0, 1, 1, 2], [0], [0]>} : vector<2x8x8xf32>, vector<2x8x8xf32>, vector<2x8x8xf32> -> vector<2x8x8xf32>
    "tpu.trace_stop"() : () -> ()
    %72 = vector.extract_strided_slice %37 {offsets = [0, 0, 16], sizes = [2, 8, 8], strides = [1, 1, 1]} : vector<2x8x96xf32> to vector<2x8x8xf32>
    %73 = vector.extract_strided_slice %37 {offsets = [0, 0, 48], sizes = [2, 8, 8], strides = [1, 1, 1]} : vector<2x8x96xf32> to vector<2x8x8xf32>
    %74 = vector.extract_strided_slice %37 {offsets = [0, 0, 80], sizes = [2, 8, 8], strides = [1, 1, 1]} : vector<2x8x96xf32> to vector<2x8x8xf32>
    "tpu.trace_start"() <{level = 10 : i32, message = "bqd,bkd->bqk"}> : () -> ()
    %cst_30 = arith.constant dense<0.000000e+00> : vector<2x8x8xf32>
    %75 = tpu.matmul %72, %73, %cst_30 {dimension_numbers = #tpu.dot_dimension_numbers<[2], [2], [1], [1], [0, 0, 0, 1, 1, 1], [0], [0]>} : vector<2x8x8xf32>, vector<2x8x8xf32>, vector<2x8x8xf32> -> vector<2x8x8xf32>
    "tpu.trace_stop"() : () -> ()
    %76 = vector.broadcast %4 : vector<2x1x8xf32> to vector<2x8x8xf32>
    %77 = arith.addf %75, %76 : vector<2x8x8xf32>
    %cst_31 = arith.constant dense<0xFF800000> : vector<2x8xf32>
    %78 = vector.multi_reduction <maximumf>, %77, %cst_31 [2] : vector<2x8x8xf32> to vector<2x8xf32>
    %79 = vector.shape_cast %78 : vector<2x8xf32> to vector<2x8x1xf32>
    %80 = vector.broadcast %79 : vector<2x8x1xf32> to vector<2x8x8xf32>
    %81 = arith.subf %77, %80 : vector<2x8x8xf32>
    %82 = math.exp %81 : vector<2x8x8xf32>
    %cst_32 = arith.constant dense<0.000000e+00> : vector<2x8xf32>
    %83 = vector.multi_reduction <add>, %82, %cst_32 [2] : vector<2x8x8xf32> to vector<2x8xf32>
    %84 = vector.shape_cast %83 : vector<2x8xf32> to vector<2x8x1xf32>
    %85 = tpu.reciprocal %84 {approx = true} : vector<2x8x1xf32> -> vector<2x8x1xf32>
    %86 = vector.broadcast %85 : vector<2x8x1xf32> to vector<2x8x8xf32>
    %87 = arith.mulf %82, %86 : vector<2x8x8xf32>
    "tpu.trace_start"() <{level = 10 : i32, message = "bqk,bkd->bqd"}> : () -> ()
    %cst_33 = arith.constant dense<0.000000e+00> : vector<2x8x8xf32>
    %88 = tpu.matmul %87, %74, %cst_33 {dimension_numbers = #tpu.dot_dimension_numbers<[2], [1], [1], [2], [0, 0, 0, 1, 1, 2], [0], [0]>} : vector<2x8x8xf32>, vector<2x8x8xf32>, vector<2x8x8xf32> -> vector<2x8x8xf32>
    "tpu.trace_stop"() : () -> ()
    %89 = vector.extract_strided_slice %37 {offsets = [0, 0, 24], sizes = [2, 8, 8], strides = [1, 1, 1]} : vector<2x8x96xf32> to vector<2x8x8xf32>
    %90 = vector.extract_strided_slice %37 {offsets = [0, 0, 56], sizes = [2, 8, 8], strides = [1, 1, 1]} : vector<2x8x96xf32> to vector<2x8x8xf32>
    %91 = vector.extract_strided_slice %37 {offsets = [0, 0, 88], sizes = [2, 8, 8], strides = [1, 1, 1]} : vector<2x8x96xf32> to vector<2x8x8xf32>
    "tpu.trace_start"() <{level = 10 : i32, message = "bqd,bkd->bqk"}> : () -> ()
    %cst_34 = arith.constant dense<0.000000e+00> : vector<2x8x8xf32>
    %92 = tpu.matmul %89, %90, %cst_34 {dimension_numbers = #tpu.dot_dimension_numbers<[2], [2], [1], [1], [0, 0, 0, 1, 1, 1], [0], [0]>} : vector<2x8x8xf32>, vector<2x8x8xf32>, vector<2x8x8xf32> -> vector<2x8x8xf32>
    "tpu.trace_stop"() : () -> ()
    %93 = vector.broadcast %4 : vector<2x1x8xf32> to vector<2x8x8xf32>
    %94 = arith.addf %92, %93 : vector<2x8x8xf32>
    %cst_35 = arith.constant dense<0xFF800000> : vector<2x8xf32>
    %95 = vector.multi_reduction <maximumf>, %94, %cst_35 [2] : vector<2x8x8xf32> to vector<2x8xf32>
    %96 = vector.shape_cast %95 : vector<2x8xf32> to vector<2x8x1xf32>
    %97 = vector.broadcast %96 : vector<2x8x1xf32> to vector<2x8x8xf32>
    %98 = arith.subf %94, %97 : vector<2x8x8xf32>
    %99 = math.exp %98 : vector<2x8x8xf32>
    %cst_36 = arith.constant dense<0.000000e+00> : vector<2x8xf32>
    %100 = vector.multi_reduction <add>, %99, %cst_36 [2] : vector<2x8x8xf32> to vector<2x8xf32>
    %101 = vector.shape_cast %100 : vector<2x8xf32> to vector<2x8x1xf32>
    %102 = tpu.reciprocal %101 {approx = true} : vector<2x8x1xf32> -> vector<2x8x1xf32>
    %103 = vector.broadcast %102 : vector<2x8x1xf32> to vector<2x8x8xf32>
    %104 = arith.mulf %99, %103 : vector<2x8x8xf32>
    "tpu.trace_start"() <{level = 10 : i32, message = "bqk,bkd->bqd"}> : () -> ()
    %cst_37 = arith.constant dense<0.000000e+00> : vector<2x8x8xf32>
    %105 = tpu.matmul %104, %91, %cst_37 {dimension_numbers = #tpu.dot_dimension_numbers<[2], [1], [1], [2], [0, 0, 0, 1, 1, 2], [0], [0]>} : vector<2x8x8xf32>, vector<2x8x8xf32>, vector<2x8x8xf32> -> vector<2x8x8xf32>
    "tpu.trace_stop"() : () -> ()
    %106 = tpu.concatenate %54, %71, %88, %105 in 2 : vector<2x8x8xf32>, vector<2x8x8xf32>, vector<2x8x8xf32>, vector<2x8x8xf32> -> vector<2x8x32xf32>
    %107 = vector.shape_cast %106 : vector<2x8x32xf32> to vector<16x32xf32>
    %108 = arith.truncf %107 : vector<16x32xf32> to vector<16x32xbf16>
    %c0_38 = arith.constant 0 : index
    %c0_39 = arith.constant 0 : index
    %c0_40 = arith.constant 0 : index
    %109 = vector.load %arg7[%c0_38, %c0_39, %c0_40] : memref<1x32x32xbf16, #tpu.memory_space<vmem>>, vector<1x32x32xbf16>
    %110 = vector.shape_cast %109 : vector<1x32x32xbf16> to vector<32x32xbf16>
    %cst_41 = arith.constant dense<0.000000e+00> : vector<16x32xf32>
    %111 = tpu.matmul %108, %110, %cst_41 {dimension_numbers = #tpu.dot_dimension_numbers<[1], [0], [0], [1], [0, 0, 1, 1], [], []>} : vector<16x32xbf16>, vector<32x32xbf16>, vector<16x32xf32> -> vector<16x32xf32>
    %c0_42 = arith.constant 0 : index
    %c0_43 = arith.constant 0 : index
    %c0_44 = arith.constant 0 : index
    %112 = vector.load %arg8[%c0_42, %c0_43, %c0_44] : memref<1x1x32xf32, #tpu.memory_space<vmem>>, vector<1x1x32xf32>
    %113 = vector.shape_cast %112 : vector<1x1x32xf32> to vector<1x32xf32>
    %114 = vector.broadcast %113 : vector<1x32xf32> to vector<16x32xf32>
    %115 = arith.addf %111, %114 : vector<16x32xf32>
    %116 = arith.addf %3, %115 : vector<16x32xf32>
    %c0_45 = arith.constant 0 : index
    %c0_46 = arith.constant 0 : index
    %c0_47 = arith.constant 0 : index
    %117 = vector.load %arg9[%c0_45, %c0_46, %c0_47] : memref<1x1x32xf32, #tpu.memory_space<vmem>>, vector<1x1x32xf32>
    %118 = vector.shape_cast %117 : vector<1x1x32xf32> to vector<1x32xf32>
    %c0_48 = arith.constant 0 : index
    %c0_49 = arith.constant 0 : index
    %c0_50 = arith.constant 0 : index
    %119 = vector.load %arg10[%c0_48, %c0_49, %c0_50] : memref<1x1x32xf32, #tpu.memory_space<vmem>>, vector<1x1x32xf32>
    %120 = vector.shape_cast %119 : vector<1x1x32xf32> to vector<1x32xf32>
    %cst_51 = arith.constant dense<0.000000e+00> : vector<16xf32>
    %121 = vector.multi_reduction <add>, %116, %cst_51 [1] : vector<16x32xf32> to vector<16xf32>
    %122 = vector.shape_cast %121 : vector<16xf32> to vector<16x1xf32>
    %cst_52 = arith.constant 3.200000e+01 : f32
    %123 = vector.broadcast %cst_52 : f32 to vector<16x1xf32>
    %124 = arith.divf %122, %123 : vector<16x1xf32>
    %125 = vector.broadcast %124 : vector<16x1xf32> to vector<16x32xf32>
    %126 = arith.subf %116, %125 : vector<16x32xf32>
    %127 = arith.mulf %126, %126 : vector<16x32xf32>
    %cst_53 = arith.constant dense<0.000000e+00> : vector<16xf32>
    %128 = vector.multi_reduction <add>, %127, %cst_53 [1] : vector<16x32xf32> to vector<16xf32>
    %129 = vector.shape_cast %128 : vector<16xf32> to vector<16x1xf32>
    %cst_54 = arith.constant 3.100000e+01 : f32
    %130 = vector.broadcast %cst_54 : f32 to vector<16x1xf32>
    %131 = arith.divf %129, %130 : vector<16x1xf32>
    %132 = vector.broadcast %118 : vector<1x32xf32> to vector<16x32xf32>
    %133 = arith.mulf %132, %126 : vector<16x32xf32>
    %134 = math.sqrt %131 : vector<16x1xf32>
    %cst_55 = arith.constant 9.99999997E-7 : f32
    %135 = vector.broadcast %cst_55 : f32 to vector<16x1xf32>
    %136 = arith.addf %134, %135 : vector<16x1xf32>
    %137 = vector.broadcast %136 : vector<16x1xf32> to vector<16x32xf32>
    %138 = arith.divf %133, %137 : vector<16x32xf32>
    %139 = vector.broadcast %120 : vector<1x32xf32> to vector<16x32xf32>
    %140 = arith.addf %138, %139 : vector<16x32xf32>
    %141 = arith.truncf %140 : vector<16x32xf32> to vector<16x32xbf16>
    %c0_56 = arith.constant 0 : index
    %c0_57 = arith.constant 0 : index
    %c0_58 = arith.constant 0 : index
    %142 = vector.load %arg11[%c0_56, %c0_57, %c0_58] : memref<1x32x2048xbf16, #tpu.memory_space<vmem>>, vector<1x32x2048xbf16>
    %143 = vector.shape_cast %142 : vector<1x32x2048xbf16> to vector<32x2048xbf16>
    %cst_59 = arith.constant dense<0.000000e+00> : vector<16x2048xf32>
    %144 = tpu.matmul %141, %143, %cst_59 {dimension_numbers = #tpu.dot_dimension_numbers<[1], [0], [0], [1], [0, 0, 1, 1], [], []>} : vector<16x32xbf16>, vector<32x2048xbf16>, vector<16x2048xf32> -> vector<16x2048xf32>
    %c0_60 = arith.constant 0 : index
    %c0_61 = arith.constant 0 : index
    %c0_62 = arith.constant 0 : index
    %145 = vector.load %arg12[%c0_60, %c0_61, %c0_62] : memref<1x1x2048xf32, #tpu.memory_space<vmem>>, vector<1x1x2048xf32>
    %146 = vector.shape_cast %145 : vector<1x1x2048xf32> to vector<1x2048xf32>
    %147 = vector.broadcast %146 : vector<1x2048xf32> to vector<16x2048xf32>
    %148 = arith.addf %144, %147 : vector<16x2048xf32>
    %cst_63 = arith.constant 0.000000e+00 : f32
    %149 = vector.broadcast %cst_63 : f32 to vector<16x2048xf32>
    %150 = arith.maximumf %148, %149 : vector<16x2048xf32>
    %151 = arith.truncf %150 : vector<16x2048xf32> to vector<16x2048xbf16>
    %c0_64 = arith.constant 0 : index
    %c0_65 = arith.constant 0 : index
    %c0_66 = arith.constant 0 : index
    %152 = vector.load %arg13[%c0_64, %c0_65, %c0_66] : memref<1x2048x32xbf16, #tpu.memory_space<vmem>>, vector<1x2048x32xbf16>
    %153 = vector.shape_cast %152 : vector<1x2048x32xbf16> to vector<2048x32xbf16>
    %cst_67 = arith.constant dense<0.000000e+00> : vector<16x32xf32>
    %154 = tpu.matmul %151, %153, %cst_67 {dimension_numbers = #tpu.dot_dimension_numbers<[1], [0], [0], [1], [0, 0, 1, 1], [], []>} : vector<16x2048xbf16>, vector<2048x32xbf16>, vector<16x32xf32> -> vector<16x32xf32>
    %c0_68 = arith.constant 0 : index
    %c0_69 = arith.constant 0 : index
    %c0_70 = arith.constant 0 : index
    %155 = vector.load %arg14[%c0_68, %c0_69, %c0_70] : memref<1x1x32xf32, #tpu.memory_space<vmem>>, vector<1x1x32xf32>
    %156 = vector.shape_cast %155 : vector<1x1x32xf32> to vector<1x32xf32>
    %157 = vector.broadcast %156 : vector<1x32xf32> to vector<16x32xf32>
    %158 = arith.addf %154, %157 : vector<16x32xf32>
    %159 = arith.addf %116, %158 : vector<16x32xf32>
    %c0_71 = arith.constant 0 : index
    %c0_72 = arith.constant 0 : index
    %160 = vector.load %arg18[%c0_71, %c0_72] : memref<16x32xf32, #tpu.memory_space<vmem>>, vector<16x32xf32>
    tpu.vector_store %arg18[%c0_71, %c0_72], %159 {strides = array<i32>} : memref<16x32xf32, #tpu.memory_space<vmem>>, vector<16x32xf32>,
    %c5_i32 = arith.constant 5 : i32
    %161 = arith.cmpi eq, %arg0, %c5_i32 : i32
    %162 = arith.extui %161 : i1 to i32
    %c0_i32_73 = arith.constant 0 : i32
    %163 = arith.cmpi ne, %162, %c0_i32_73 : i32
    scf.if %163 {
      %c0_74 = arith.constant 0 : index
      %c0_75 = arith.constant 0 : index
      %164 = vector.load %arg15[%c0_74, %c0_75] : memref<1x32xf32, #tpu.memory_space<vmem>>, vector<1x32xf32>
      %c0_76 = arith.constant 0 : index
      %c0_77 = arith.constant 0 : index
      %165 = vector.load %arg16[%c0_76, %c0_77] : memref<1x32xf32, #tpu.memory_space<vmem>>, vector<1x32xf32>
      %cst_78 = arith.constant dense<0.000000e+00> : vector<16xf32>
      %166 = vector.multi_reduction <add>, %159, %cst_78 [1] : vector<16x32xf32> to vector<16xf32>
      %167 = vector.shape_cast %166 : vector<16xf32> to vector<16x1xf32>
      %cst_79 = arith.constant 3.200000e+01 : f32
      %168 = vector.broadcast %cst_79 : f32 to vector<16x1xf32>
      %169 = arith.divf %167, %168 : vector<16x1xf32>
      %170 = vector.broadcast %169 : vector<16x1xf32> to vector<16x32xf32>
      %171 = arith.subf %159, %170 : vector<16x32xf32>
      %172 = arith.mulf %171, %171 : vector<16x32xf32>
      %cst_80 = arith.constant dense<0.000000e+00> : vector<16xf32>
      %173 = vector.multi_reduction <add>, %172, %cst_80 [1] : vector<16x32xf32> to vector<16xf32>
      %174 = vector.shape_cast %173 : vector<16xf32> to vector<16x1xf32>
      %cst_81 = arith.constant 3.100000e+01 : f32
      %175 = vector.broadcast %cst_81 : f32 to vector<16x1xf32>
      %176 = arith.divf %174, %175 : vector<16x1xf32>
      %177 = vector.broadcast %164 : vector<1x32xf32> to vector<16x32xf32>
      %178 = arith.mulf %177, %171 : vector<16x32xf32>
      %179 = math.sqrt %176 : vector<16x1xf32>
      %cst_82 = arith.constant 9.99999997E-7 : f32
      %180 = vector.broadcast %cst_82 : f32 to vector<16x1xf32>
      %181 = arith.addf %179, %180 : vector<16x1xf32>
      %182 = vector.broadcast %181 : vector<16x1xf32> to vector<16x32xf32>
      %183 = arith.divf %178, %182 : vector<16x32xf32>
      %184 = vector.broadcast %165 : vector<1x32xf32> to vector<16x32xf32>
      %185 = arith.addf %183, %184 : vector<16x32xf32>
      %c0_83 = arith.constant 0 : index
      %c0_84 = arith.constant 0 : index
      %186 = vector.load %arg17[%c0_83, %c0_84] : memref<16x32xf32, #tpu.memory_space<vmem>>, vector<16x32xf32>
      tpu.vector_store %arg17[%c0_83, %c0_84], %185 {strides = array<i32>} : memref<16x32xf32, #tpu.memory_space<vmem>>, vector<16x32xf32>,
    } else {
    }
    return
  }
  func.func @transform_0(%arg0: i32) -> (i32, i32) {
    %c0_i32 = arith.constant 0 : i32
    %c0_i32_0 = arith.constant 0 : i32
    %c0_i32_1 = arith.constant 0 : i32
    return %c0_i32, %c0_i32_0 : i32, i32
  }
  func.func @transform_1(%arg0: i32) -> (i32, i32, i32) {
    %c0_i32 = arith.constant 0 : i32
    %c0_i32_0 = arith.constant 0 : i32
    %c0_i32_1 = arith.constant 0 : i32
    %c0_i32_2 = arith.constant 0 : i32
    return %c0_i32, %c0_i32_0, %c0_i32_1 : i32, i32, i32
  }
  func.func @transform_2(%arg0: i32) -> (i32, i32, i32) {
    %c0_i32 = arith.constant 0 : i32
    %c0_i32_0 = arith.constant 0 : i32
    %c0_i32_1 = arith.constant 0 : i32
    return %arg0, %c0_i32, %c0_i32_0 : i32, i32, i32
  }
  func.func @transform_3(%arg0: i32) -> (i32, i32, i32) {
    %c0_i32 = arith.constant 0 : i32
    %c0_i32_0 = arith.constant 0 : i32
    %c0_i32_1 = arith.constant 0 : i32
    return %arg0, %c0_i32, %c0_i32_0 : i32, i32, i32
  }
  func.func @transform_4(%arg0: i32) -> (i32, i32, i32) {
    %c0_i32 = arith.constant 0 : i32
    %c0_i32_0 = arith.constant 0 : i32
    %c0_i32_1 = arith.constant 0 : i32
    return %arg0, %c0_i32, %c0_i32_0 : i32, i32, i32
  }
  func.func @transform_5(%arg0: i32) -> (i32, i32, i32) {
    %c0_i32 = arith.constant 0 : i32
    %c0_i32_0 = arith.constant 0 : i32
    %c0_i32_1 = arith.constant 0 : i32
    return %arg0, %c0_i32, %c0_i32_0 : i32, i32, i32
  }
  func.func @transform_6(%arg0: i32) -> (i32, i32, i32) {
    %c0_i32 = arith.constant 0 : i32
    %c0_i32_0 = arith.constant 0 : i32
    %c0_i32_1 = arith.constant 0 : i32
    return %arg0, %c0_i32, %c0_i32_0 : i32, i32, i32
  }
  func.func @transform_7(%arg0: i32) -> (i32, i32, i32) {
    %c0_i32 = arith.constant 0 : i32
    %c0_i32_0 = arith.constant 0 : i32
    %c0_i32_1 = arith.constant 0 : i32
    return %arg0, %c0_i32, %c0_i32_0 : i32, i32, i32
  }
  func.func @transform_8(%arg0: i32) -> (i32, i32, i32) {
    %c0_i32 = arith.constant 0 : i32
    %c0_i32_0 = arith.constant 0 : i32
    %c0_i32_1 = arith.constant 0 : i32
    return %arg0, %c0_i32, %c0_i32_0 : i32, i32, i32
  }
  func.func @transform_9(%arg0: i32) -> (i32, i32, i32) {
    %c0_i32 = arith.constant 0 : i32
    %c0_i32_0 = arith.constant 0 : i32
    %c0_i32_1 = arith.constant 0 : i32
    return %arg0, %c0_i32, %c0_i32_0 : i32, i32, i32
  }
  func.func @transform_10(%arg0: i32) -> (i32, i32, i32) {
    %c0_i32 = arith.constant 0 : i32
    %c0_i32_0 = arith.constant 0 : i32
    %c0_i32_1 = arith.constant 0 : i32
    return %arg0, %c0_i32, %c0_i32_0 : i32, i32, i32
  }
  func.func @transform_11(%arg0: i32) -> (i32, i32, i32) {
    %c0_i32 = arith.constant 0 : i32
    %c0_i32_0 = arith.constant 0 : i32
    %c0_i32_1 = arith.constant 0 : i32
    return %arg0, %c0_i32, %c0_i32_0 : i32, i32, i32
  }
  func.func @transform_12(%arg0: i32) -> (i32, i32, i32) {
    %c0_i32 = arith.constant 0 : i32
    %c0_i32_0 = arith.constant 0 : i32
    %c0_i32_1 = arith.constant 0 : i32
    return %arg0, %c0_i32, %c0_i32_0 : i32, i32, i32
  }
  func.func @transform_13(%arg0: i32) -> (i32, i32, i32) {
    %c0_i32 = arith.constant 0 : i32
    %c0_i32_0 = arith.constant 0 : i32
    %c0_i32_1 = arith.constant 0 : i32
    return %arg0, %c0_i32, %c0_i32_0 : i32, i32, i32
  }
  func.func @transform_14(%arg0: i32) -> (i32, i32) {
    %c0_i32 = arith.constant 0 : i32
    %c0_i32_0 = arith.constant 0 : i32
    %c0_i32_1 = arith.constant 0 : i32
    return %c0_i32, %c0_i32_0 : i32, i32
  }
  func.func @transform_15(%arg0: i32) -> (i32, i32) {
    %c0_i32 = arith.constant 0 : i32
    %c0_i32_0 = arith.constant 0 : i32
    %c0_i32_1 = arith.constant 0 : i32
    return %c0_i32, %c0_i32_0 : i32, i32
  }
  func.func @transform_16(%arg0: i32) -> (i32, i32) {
    %c0_i32 = arith.constant 0 : i32
    %c0_i32_0 = arith.constant 0 : i32
    %c0_i32_1 = arith.constant 0 : i32
    return %c0_i32, %c0_i32_0 : i32, i32
  }
}

</mosaic_0001>

<bundles_post_ra>
// kernel: encoder_pallas.1
= control target key start
LH: loop header
LB: loop body
LE: loop exit
PB: predicated region body
PF: predicated region fallthrough
CT: control target
= control target key end

     0   :  { %s5274_s0 = inlined_call_operand.vmem [shape: f32[16,32], index: 0, kind: input, shape index: {}]   ;;  %s5275_s1 = inlined_call_operand.vmem [shape: f32[2,1,8], index: 1, kind: input, shape index: {}]   ;;  %s5276_s2 = inlined_call_operand.vmem [shape: f32[6,1,32], index: 2, kind: input, shape index: {}]   ;;  %s5277_s3 = inlined_call_operand.vmem [shape: f32[6,1,32], index: 3, kind: input, shape index: {}]   ;;  %s5278_s4 = inlined_call_operand.vmem [shape: bf16[6,32,96], index: 4, kind: input, shape index: {}]   ;;  %s5279_s5 = inlined_call_operand.vmem [shape: f32[6,1,96], index: 5, kind: input, shape index: {}]   ;;  %s5280_s6 = inlined_call_operand.vmem [shape: bf16[6,32,32], index: 6, kind: input, shape index: {}]   ;;  %s5281_s7 = inlined_call_operand.vmem [shape: f32[6,1,32], index: 7, kind: input, shape index: {}]   ;;  %s5282_s8 = inlined_call_operand.vmem [shape: f32[6,1,32], index: 8, kind: input, shape index: {}]   ;;  %s5283_s9 = inlined_call_operand.vmem [shape: f32[6,1,32], index: 9, kind: input, shape index: {}]   ;;  %s5284_s10 = inlined_call_operand.vmem [shape: bf16[6,32,2048], index: 10, kind: input, shape index: {}]   ;;  %s5285_s11 = inlined_call_operand.vmem [shape: f32[6,1,2048], index: 11, kind: input, shape index: {}]   ;;  %s5286_s12 = inlined_call_operand.vmem [shape: bf16[6,2048,32], index: 12, kind: input, shape index: {}]   ;;  %s5287_s13 = inlined_call_operand.vmem [shape: f32[6,1,32], index: 13, kind: input, shape index: {}]   ;;  %s5288_s14 = inlined_call_operand.vmem [shape: f32[1,32], index: 14, kind: input, shape index: {}]   ;;  %s5289_s15 = inlined_call_operand.vmem [shape: f32[1,32], index: 15, kind: input, shape index: {}]   ;;  %s5290_s16 = inlined_call_operand.hbm [shape: f32[16,32], index: 16, kind: output, shape index: {}]  }
   0x1   :  { %5294 = sst [smem:[#allocation7_spill]] %s5274_s0 }
   0x2   :  { %5295 = sst [smem:[#allocation8_spill]] %s5275_s1 }
   0x3   :  { %5296 = sst [smem:[#allocation9_spill]] %s5278_s4 }
   0x4   :  { %5297 = sst [smem:[#allocation10_spill]] %s5280_s6 }
   0x5   :  { %5298 = sst [smem:[#allocation11_spill]] %s5288_s14 }
   0x6   :  { %5299 = sst [smem:[#allocation12_spill]] %s5289_s15 }
   0x7   :  { %5300 = sst [smem:[#allocation13_spill]] %s5290_s16 }
   0x8   :  { %21 = vsyncpa [#allocation4], 0  ;;  %s4699_s21 = smov 0  }
   0x9 LB: > { %5301 = sst [smem:[#allocation6_spill]] %s4594_s21  ;;  %s4705_s22 = sadd.s32 4294967295, %s4594_s21   ;;  %s4594_s21 = sphi %s4699_s21, %s27_s21  }
   0xa   : > { %p3541_p0 = scmp.ge.s32.totalorder %s4594_s21, 1  ;;  %p553_p1 = scmp.lt.s32.totalorder %s4594_s21, 7 }
   0xc   : > { %p554_p2 = pnand %p3541_p0, %p553_p1 }
   0xd   : > { %p638_p3 = scmp.lt.s32.totalorder (!%p554_p2), %s4705_s22, 5  ;;  %s5302_s4 = sld [smem:[#allocation9_spill]] (!%p554_p2) }
   0xe   : > { %557 = sbr.rel (%p554_p2) target bundleno = 2389 (0x955), region = 84  ;;  %s5303_s6 = sld [smem:[#allocation10_spill]] (!%p554_p2) }
   0xf   : > { %p3551_p4 = scmp.ne.s32.totalorder (!%p554_p2), %s4705_s22, 0 }
  0x13   : > { %s4711_s23 = scalar_select %p638_p3, %s4705_s22, 5 }
  0x15   : > { %s4255_s30 = sshll.u32 %s4711_s23, 4  ;;  %s665_s18 = scalar_lea.vmem %s5283_s9, %s4711_s23 }
  0x16   : > { %s4729_s24 = scalar_lea.vmem %s5302_s4, %s4255_s30  ;;  %s4734_s16 = scalar_lea.vmem %s5303_s6, %s4255_s30 }
  0x17   : > { %s4257_s19 = sshll.u32 %s4711_s23, 8  ;;  %s4757_s6 = scalar_lea.vmem %s5285_s11, %s4255_s30 }
  0x18   : > { %s4752_s1 = scalar_lea.vmem %s5284_s10, %s4257_s19  ;;  %s4258_s15 = sshll.u32 %s4711_s23, 10 }
  0x19   : > { %s682_s29 = scalar_lea.vmem %s5287_s13, %s4711_s23  ;;  %s4767_s0 = scalar_lea.vmem %s5286_s12, %s4258_s15 }
  0x1a   : > { %687 = sbr.rel (%p3551_p4) target bundleno = 35 (0x23), region = 88  ;;  %s5304_s19 = sld [smem:[#allocation7_spill]] (!%p3551_p4) }
  0x1f   : > { %vm690_vm0 = vcmask 261120  }
  0x20   : > { %v688_v0 = vld [vmem:[%s5304_s19] sm:$0xff]  ;;  %v689_v1 = vld [vmem:[%s5304_s19 + $0x8] sm:$0xff] }
  0x21   : > { %691 = vst.msk [vmem:[#allocation2] sm:$0xff] %vm690_vm0, %v688_v0 }
  0x22   : > { %692 = vst.msk [vmem:[#allocation2 + $0x8] sm:$0xff] %vm690_vm0, %v689_v1 }
  0x23 PF: > { %vm699_vm1 = vcmask 261120   ;;  %v4596_v6 = vmov 32.0   ;;  %v4597_v23 = vmov 31.0   ;;  %v4260_v30 = vld [vmem:[%s4729_s24 + $0x8] sm:$0xff]  ;;  %v4259_v32 = vld [vmem:[%s4729_s24] sm:$0xff]  ;;  %s5305_s27 = scalar_lea.vmem %s5276_s2, %s4711_s23  ;;  %s5306_s15 = scalar_lea.vmem %s5277_s3, %s4711_s23  ;;  %vm847_vm0 = vcmask 64512  }
  0x24   : > { %4494 = vrcp.f32 %v4596_v6  ;;  %830 = vmatpush.bf16.msra.mxu0 %v4260_v30  ;;  %s5307_s4 = scalar_lea.vmem %s5279_s5, %s4711_s23  ;;  %s4598_s17 = smov 96  }
  0x25   : > { %4496 = vrcp.f32 %v4597_v23  ;;  %s4599_s30 = smov 120   ;;  %s4600_s20 = smov 88  }
  0x26   : > { %s4601_s14 = smov 104   ;;  %s4602_s24 = smov 112  }
  0x27   : > { %s4604_s21 = smov 80   ;;  %s5308_s26 = sld [smem:[#allocation8_spill]] }
  0x28   : > { %v4776_v2 = vld [vmem:[#allocation2] sm:$0xff]  ;;  %831 = vmatpush.bf16.msra.mxu0 %v4259_v32  ;;  %p4250_p5 = scmp.ne.s32.totalorder %s4705_s22, 5 }
  0x29   : > { %v700_v3 = vsel %vm699_vm1, %v4776_v2, 0.0  ;;  %v4780_v4 = vld [vmem:[#allocation2 + $0x8] sm:$0xff] }
  0x2a   : > { %701 = vadd.xlane.f32.xlu0 %v700_v3  ;;  %v703_v5 = vsel %vm699_vm1, %v4780_v4, 0.0  ;;  %v4495_v7 = vpop.eup %4494 }
  0x2b   : > { %v707_v8 = vmul.f32 32.0, %v4495_v7  ;;  %vm711_vm2 = vweird.f32 %v4495_v7  ;;  %v4497_v24 = vpop.eup %4496 }
  0x2c   : > { %v726_v25 = vmul.f32 31.0, %v4497_v24  ;;  %vm730_vm3 = vweird.f32 %v4497_v24 }
  0x2d   : > { %v708_v9 = vsub.f32 1.0, %v707_v8 }
  0x2e   : > { %v727_v26 = vsub.f32 1.0, %v726_v25 }
  0x2f   : > { %v709_v10 = vmul.f32 %v4495_v7, %v708_v9 }
  0x30   : > { %v728_v27 = vmul.f32 %v4497_v24, %v727_v26 }
  0x31   : > { %v710_v11 = vadd.f32 %v4495_v7, %v709_v10 }
  0x32   : > { %704 = vadd.xlane.f32.xlu0 %v703_v5  ;;  %v729_v28 = vadd.f32 %v4497_v24, %v728_v27  ;;  %v4485_v5 = vld [vmem:[%s5305_s27] ss:$0 sm:$0xff]  ;;  %s4603_s27 = smov 72  }
  0x33   : > { %v4784_v12 = vsel %vm711_vm2, %v4495_v7, %v710_v11  ;;  %vm1389_vm2 = vcmask 130048  }
  0x34   : > { %v4800_v29 = vsel %vm730_vm3, %v4497_v24, %v729_v28  ;;  %vm1392_vm3 = vcmask 195584  }
  0x9d   : > { %v702_v13 = vpop.xlane.xlu0 %701 }
  0x9e   : > { %v713_v14 = vmul.f32 %v4784_v12, %v702_v13 }
  0xa0   : > { %v4788_v15 = vsub.f32 %v4776_v2, %v713_v14 }
  0xa2   : > { %v717_v16 = vmul.f32 %v4788_v15, %v4788_v15  ;;  %v737_v14 = vmul.f32 %v4485_v5, %v4788_v15 }
  0xa4   : > { %v719_v17 = vsel %vm699_vm1, %v717_v16, 0.0 }
  0xa5   : > { %720 = vadd.xlane.f32.xlu1 %v719_v17  ;;  %v705_v18 = vpop.xlane.xlu0 %704 }
  0xa6   : > { %v714_v19 = vmul.f32 %v4784_v12, %v705_v18 }
  0xa8   : > { %v4795_v20 = vsub.f32 %v4780_v4, %v714_v19 }
  0xaa   : > { %v718_v21 = vmul.f32 %v4795_v20, %v4795_v20  ;;  %v738_v18 = vmul.f32 %v4485_v5, %v4795_v20  ;;  %v4487_v20 = vld [vmem:[%s5307_s4] ss:$0 sm:$0xff] }
  0xac   : > { %v722_v22 = vsel %vm699_vm1, %v718_v21, 0.0 }
  0xad   : > { %723 = vadd.xlane.f32.xlu1 %v722_v22  ;;  %v4486_v22 = vld [vmem:[%s5306_s15] ss:$0 sm:$0xff]  ;;  %s5309_s15 = scalar_lea.vmem %s5281_s7, %s4711_s23 }
 0x118   : > { %v721_v31 = vpop.xlane.xlu1 %720 }
 0x119   : > { %v732_v33 = vmul.f32 %v4800_v29, %v721_v31 }
 0x11b   : > { %4498 = vrsqrt.f32 %v732_v33  ;;  %vm746_vm4 = vcmp.eq.f32.partialorder %v732_v33, inf  ;;  %v749_v46 = vand.u32 2147483648, %v732_v33  ;;  %vm748_vm5 = vcmp.eq.f32.partialorder %v732_v33, 0.0 }
 0x120   : > { %v724_v34 = vpop.xlane.xlu1 %723 }
 0x121   : > { %v4499_v35 = vpop.eup %4498  ;;  %v733_v36 = vmul.f32 %v4800_v29, %v724_v34 }
 0x122   : > { %v740_v37 = vmul.f32 %v4499_v35, %v732_v33 }
 0x123   : > { %4500 = vrsqrt.f32 %v733_v36  ;;  %vm758_vm6 = vcmp.eq.f32.partialorder %v733_v36, inf  ;;  %v761_v54 = vand.u32 2147483648, %v733_v36  ;;  %vm760_vm7 = vcmp.eq.f32.partialorder %v733_v36, 0.0 }
 0x124   : > { %v741_v38 = vmul.f32 %v4499_v35, %v740_v37 }
 0x126   : > { %v742_v39 = vmul.f32 0.5, %v741_v38 }
 0x128   : > { %v743_v40 = vsub.f32 1.5, %v742_v39 }
 0x129   : > { %v4501_v41 = vpop.eup %4500 }
 0x12a   : > { %v744_v42 = vmul.f32 %v4499_v35, %v743_v40  ;;  %v752_v43 = vmul.f32 %v4501_v41, %v733_v36 }
 0x12c   : > { %v745_v44 = vmul.f32 %v744_v42, %v732_v33  ;;  %v753_v45 = vmul.f32 %v4501_v41, %v752_v43 }
 0x12e   : > { %v747_v47 = vsel %vm746_vm4, %v732_v33, %v745_v44  ;;  %v754_v48 = vmul.f32 0.5, %v753_v45 }
 0x12f   : > { %v750_v49 = vsel %vm748_vm5, %v749_v46, %v747_v47  ;;  %v4488_v46 = vld [vmem:[%s5308_s26] ss:$0 sm:$0xff] }
 0x130   : > { %v755_v50 = vsub.f32 1.5, %v754_v48  ;;  %v763_v51 = vadd.f32 1e-06, %v750_v49 }
 0x132   : > { %v756_v52 = vmul.f32 %v4501_v41, %v755_v50  ;;  %4502 = vrcp.f32 %v763_v51  ;;  %v776_v0 = vand.u32 2147483648, %v763_v51  ;;  %vm770_vm9 = vweird.f32 %v763_v51  ;;  %v4489_v50 = vld [vmem:[%s5308_s26 + $0x1] ss:$0 sm:$0xff] }
 0x133   : > { %v774_v1 = vand.u32 2147483647, %v763_v51 }
 0x134   : > { %v757_v53 = vmul.f32 %v756_v52, %v733_v36  ;;  %v777_v8 = vor.u32 1.1754944e-38, %v776_v0 }
 0x135   : > { %vm775_vm11 = vcmp.eq.f32.partialorder %v774_v1, 8.507059e+37 }
 0x136   : > { %v759_v55 = vsel %vm758_vm6, %v733_v36, %v757_v53 }
 0x137   : > { %v762_v56 = vsel %vm760_vm7, %v761_v54, %v759_v55 }
 0x138   : > { %v4503_v57 = vpop.eup %4502  ;;  %v764_v58 = vadd.f32 1e-06, %v762_v56 }
 0x139   : > { %v766_v59 = vmul.f32 %v4503_v57, %v763_v51  ;;  %vm771_vm8 = vweird.f32 %v4503_v57 }
 0x13a   : > { %4504 = vrcp.f32 %v764_v58  ;;  %vm772_vm10 = vmor %vm770_vm9, %vm771_vm8  ;;  %v791_v9 = vand.u32 2147483648, %v764_v58  ;;  %v789_v11 = vand.u32 2147483647, %v764_v58  ;;  %vm785_vm13 = vweird.f32 %v764_v58 }
 0x13b   : > { %v767_v60 = vsub.f32 1.0, %v766_v59 }
 0x13c   : > { %v792_v17 = vor.u32 1.1754944e-38, %v791_v9  ;;  %vm790_vm15 = vcmp.eq.f32.partialorder %v789_v11, 8.507059e+37 }
 0x13d   : > { %v768_v61 = vmul.f32 %v4503_v57, %v767_v60 }
 0x13f   : > { %v769_v62 = vadd.f32 %v4503_v57, %v768_v61 }
 0x140   : > { %v4505_v63 = vpop.eup %4504 }
 0x141   : > { %v781_v3 = vmul.f32 %v4505_v63, %v764_v58  ;;  %v773_v6 = vsel %vm772_vm10, %v4503_v57, %v769_v62  ;;  %vm786_vm12 = vweird.f32 %v4505_v63 }
 0x142   : > { %v778_v13 = vsel %vm775_vm11, %v777_v8, %v773_v6  ;;  %vm787_vm14 = vmor %vm785_vm13, %vm786_vm12 }
 0x143   : > { %v782_v7 = vsub.f32 1.0, %v781_v3  ;;  %v779_v19 = vmul.f32 %v778_v13, %v737_v14 }
 0x145   : > { %v783_v10 = vmul.f32 %v4505_v63, %v782_v7  ;;  %v798_v25 = vadd.f32 %v4486_v22, %v779_v19 }
 0x147   : > { %v784_v16 = vadd.f32 %v4505_v63, %v783_v10 }
 0x149   : > { %v788_v21 = vsel %vm787_vm14, %v4505_v63, %v784_v16 }
 0x14a   : > { %v793_v23 = vsel %vm790_vm15, %v792_v17, %v788_v21 }
 0x14b   : > { %v794_v24 = vmul.f32 %v793_v23, %v738_v18 }
 0x14d   : > { %v799_v26 = vadd.f32 %v4486_v22, %v794_v24 }
 0x14f   : > { %v800_v15 = vpack.c.bf16 %v799_v26, %v798_v25 }
 0x151   : > { %3560 = vmatmul.msk.bf16.vlgmr.msra.gmra.mxu0 %vm699_vm1, %v800_v15 }
 0x1ce   : > { %v833_v27 = vpop.f32.mrf.mxu0 }
 0x1cf   : > { %v4824_v28 = vadd.f32 %v4487_v20, %v833_v27 }
 0x1d1   : > { %845 = vrot.lane.b32.xlu2 %v4824_v28, %s4598_s17 }
 0x1d6   : > { %v835_v30 = vpop.f32.mrf.mxu0 }
 0x1d7   : > { %v4827_v31 = vadd.f32 %v4487_v20, %v835_v30 }
 0x1d9   : > { %1001 = vrot.lane.b32.xlu1 %v4827_v31, %s4599_s30  ;;  %1003 = vrot.lane.b32.xlu0 %v4827_v31, %s4600_s20  ;;  %v4455_v10 = vpack.i.bf16 %v4827_v31, %v4824_v28 }
 0x1da   : > { %873 = vrot.lane.b32.xlu2 %v4827_v31, %s4598_s17  ;;  %s4605_s17 = smov 64  }
 0x1e1   : > { %1233 = vrot.lane.b32.xlu1 %v4824_v28, %s4601_s14  ;;  %1103 = vrot.lane.b32.xlu0 %v4824_v28, %s4602_s24 }
 0x1e2   : > { %975 = vrot.lane.b32.xlu2 %v4824_v28, %s4600_s20  ;;  %s4607_s20 = smov 48  }
 0x1e9   : > { %1263 = vrot.lane.b32.xlu1 %v4827_v31, %s4603_s27  ;;  %1133 = vrot.lane.b32.xlu0 %v4827_v31, %s4604_s21 }
 0x1ea   : > { %1105 = vrot.lane.b32.xlu2 %v4824_v28, %s4604_s21  ;;  %s4611_s21 = smov 24  }
 0x1f1   : > { %1261 = vrot.lane.b32.xlu0 %v4827_v31, %s4601_s14  ;;  %s4608_s14 = smov 40  }
 0x1f2   : > { %973 = vrot.lane.b32.xlu2 %v4824_v28, %s4599_s30  ;;  %s4606_s30 = smov 56  }
 0x1fa   : > { %1235 = vrot.lane.b32.xlu2 %v4824_v28, %s4603_s27  ;;  %s4610_s27 = smov 16  }
 0x202   : > { %1131 = vrot.lane.b32.xlu2 %v4827_v31, %s4602_s24  ;;  %s4609_s24 = smov 8  }
 0x22b   : > { %v846_v32 = vpop.permute.xlu2 %845 }
 0x22c   : > { %3561 = vmatpush.xpose.msk.msra.mxu1 %vm847_vm0, %v846_v32 }
 0x22f   : > { %3562 = vmatmul.msk.f32.vlgmr.msra.gmra.mxu1 %vm847_vm0, %v4824_v28 }
 0x234   : > { %v874_v33 = vpop.permute.xlu2 %873 }
 0x235   : > { %3563 = vmatpush.xpose.msk.msrb.mxu0 %vm847_vm0, %v874_v33 }
 0x238   : > { %3564 = vmatmul.msk.f32.vlgmr.msrb.gmra.mxu0 %vm847_vm0, %v4827_v31 }
 0x23c   : > { %v976_v34 = vpop.permute.xlu2 %975 }
 0x23d   : > { %3567 = vmatpush.xpose.msk.msrb.mxu1 %vm847_vm0, %v976_v34 }
 0x244   : > { %v1106_v35 = vpop.permute.xlu2 %1105 }
 0x24b   : > { %v1002_v36 = vpop.permute.xlu1 %1001  ;;  %v1004_v37 = vpop.permute.xlu0 %1003 }
 0x24c   : > { %v974_v38 = vpop.permute.xlu2 %973  ;;  %3569 = vmatpush.xpose.msk.msra.mxu2 %vm847_vm0, %v1004_v37 }
 0x24d   : > { %3568 = vmatmul.msk.f32.vlgmr.msrb.gmra.mxu1 %vm847_vm0, %v974_v38 }
 0x24f   : > { %3570 = vmatmul.msk.f32.vlgmr.msra.gmra.mxu2 %vm847_vm0, %v1002_v36 }
 0x250   : > { %3573 = vmatpush.xpose.msk.msrb.mxu2 %vm847_vm0, %v1106_v35 }
 0x253   : > { %v1234_v39 = vpop.permute.xlu1 %1233  ;;  %v1104_v40 = vpop.permute.xlu0 %1103 }
 0x254   : > { %v1236_v41 = vpop.permute.xlu2 %1235 }
 0x255   : > { %3579 = vmatpush.xpose.msk.msra.mxu2 %vm847_vm0, %v1236_v41 }
 0x257   : > { %3574 = vmatmul.msk.f32.vlgmr.msrb.gmra.mxu2 %vm847_vm0, %v1104_v40 }
 0x25b   : > { %v1264_v42 = vpop.permute.xlu1 %1263  ;;  %v1134_v43 = vpop.permute.xlu0 %1133 }
 0x25c   : > { %3575 = vmatpush.xpose.msk.msra.mxu0 %vm847_vm0, %v1134_v43  ;;  %v1132_v44 = vpop.permute.xlu2 %1131 }
 0x25f   : > { %3576 = vmatmul.msk.f32.vlgmr.msra.gmra.mxu0 %vm847_vm0, %v1132_v44  ;;  %3580 = vmatmul.msk.f32.vlgmr.msra.gmra.mxu2 %vm847_vm0, %v1234_v39 }
 0x260   : > { %3581 = vmatpush.xpose.msk.msrb.mxu0 %vm847_vm0, %v1264_v42 }
 0x263   : > { %v1262_v45 = vpop.permute.xlu0 %1261 }
 0x267   : > { %3582 = vmatmul.msk.f32.vlgmr.msrb.gmra.mxu0 %vm847_vm0, %v1262_v45 }
 0x2ac   : > { %v869_v47 = vpop.f32.mrf.mxu1 }
 0x2ad   : > { %v870_v48 = vadd.f32 %v4488_v46, %v869_v47 }
 0x2af   : > { %v899_v49 = vsel %vm847_vm0, %v870_v48, -inf }
 0x2b0   : > { %900 = vmax.xlane.f32.xlu2 %v899_v49 }
 0x2b5   : > { %v896_v51 = vpop.f32.mrf.mxu0 }
 0x2b6   : > { %v897_v52 = vadd.f32 %v4489_v50, %v896_v51 }
 0x2b8   : > { %v902_v53 = vsel %vm847_vm0, %v897_v52, -inf }
 0x2b9   : > { %903 = vmax.xlane.f32.xlu1 %v902_v53 }
 0x2ca   : > { %v998_v54 = vpop.f32.mrf.mxu1 }
 0x2cb   : > { %v999_v55 = vadd.f32 %v4488_v46, %v998_v54 }
 0x2cd   : > { %v1029_v56 = vsel %vm847_vm0, %v999_v55, -inf }
 0x2ce   : > { %1030 = vmax.xlane.f32.xlu0 %v1029_v56 }
 0x2d2   : > { %v1026_v57 = vpop.f32.mrf.mxu2 }
 0x2d3   : > { %v1027_v58 = vadd.f32 %v4489_v50, %v1026_v57 }
 0x2d5   : > { %v1032_v59 = vsel %vm847_vm0, %v1027_v58, -inf }
 0x2d6   : > { %1033 = vmax.xlane.f32.xlu2 %v1032_v59 }
 0x2da   : > { %v1128_v60 = vpop.f32.mrf.mxu2 }
 0x2db   : > { %v1129_v61 = vadd.f32 %v4488_v46, %v1128_v60 }
 0x2dc   : > { %v1156_v62 = vpop.f32.mrf.mxu0 }
 0x2dd   : > { %v1157_v63 = vadd.f32 %v4489_v50, %v1156_v62  ;;  %v1159_v0 = vsel %vm847_vm0, %v1129_v61, -inf }
 0x2de   : > { %1160 = vmax.xlane.f32.xlu1 %v1159_v0 }
 0x2df   : > { %v1162_v1 = vsel %vm847_vm0, %v1157_v63, -inf }
 0x2e0   : > { %1163 = vmax.xlane.f32.xlu0 %v1162_v1 }
 0x2e2   : > { %v1258_v3 = vpop.f32.mrf.mxu2 }
 0x2e3   : > { %v1259_v5 = vadd.f32 %v4488_v46, %v1258_v3 }
 0x2e4   : > { %v1286_v6 = vpop.f32.mrf.mxu0 }
 0x2e5   : > { %v4872_v7 = vadd.f32 %v4489_v50, %v1286_v6  ;;  %v1289_v8 = vsel %vm847_vm0, %v1259_v5, -inf }
 0x2e6   : > { %1290 = vmax.xlane.f32.xlu2 %v1289_v8 }
 0x2e7   : > { %v1292_v9 = vsel %vm847_vm0, %v4872_v7, -inf }
 0x2e8   : > { %1293 = vmax.xlane.f32.xlu1 %v1292_v9 }
 0x301   : > { %4456 = vrot.lane.b32.xlu1 %v4455_v10, %s4605_s17  ;;  %s5310_s17 = scalar_lea.vmem %s5282_s8, %s4711_s23 }
 0x323   : > { %v901_v11 = vpop.xlane.xlu2 %900 }
 0x324   : > { %v905_v13 = vsub.f32 %v870_v48, %v901_v11 }
 0x326   : > { %v907_v14 = vmul.f32 1.442695, %v905_v13 }
 0x328   : > { %4506 = vpow2.f32 %v907_v14 }
 0x32c   : > { %v904_v16 = vpop.xlane.xlu1 %903 }
 0x32d   : > { %v906_v17 = vsub.f32 %v897_v52, %v904_v16 }
 0x32e   : > { %v4879_v18 = vpop.eup %4506 }
 0x32f   : > { %v909_v19 = vmul.f32 1.442695, %v906_v17  ;;  %v911_v21 = vsel %vm847_vm0, %v4879_v18, 0.0 }
 0x330   : > { %912 = vadd.xlane.f32.xlu0 %v911_v21 }
 0x331   : > { %4508 = vpow2.f32 %v909_v19 }
 0x337   : > { %v4883_v22 = vpop.eup %4508 }
 0x338   : > { %v914_v23 = vsel %vm847_vm0, %v4883_v22, 0.0 }
 0x339   : > { %915 = vadd.xlane.f32.xlu2 %v914_v23 }
 0x341   : > { %v1031_v24 = vpop.xlane.xlu0 %1030 }
 0x342   : > { %v1035_v25 = vsub.f32 %v999_v55, %v1031_v24 }
 0x344   : > { %v1037_v26 = vmul.f32 1.442695, %v1035_v25 }
 0x346   : > { %4510 = vpow2.f32 %v1037_v26 }
 0x349   : > { %v1034_v15 = vpop.xlane.xlu2 %1033 }
 0x34a   : > { %v1036_v20 = vsub.f32 %v1027_v58, %v1034_v15 }
 0x34c   : > { %v4887_v27 = vpop.eup %4510  ;;  %v1039_v30 = vmul.f32 1.442695, %v1036_v20 }
 0x34d   : > { %v1041_v32 = vsel %vm847_vm0, %v4887_v27, 0.0 }
 0x34e   : > { %4512 = vpow2.f32 %v1039_v30  ;;  %1042 = vadd.xlane.f32.xlu0 %v1041_v32 }
 0x351   : > { %v1161_v33 = vpop.xlane.xlu1 %1160 }
 0x352   : > { %v1165_v37 = vsub.f32 %v1129_v61, %v1161_v33 }
 0x353   : > { %v1164_v34 = vpop.xlane.xlu0 %1163 }
 0x354   : > { %v4513_v35 = vpop.eup %4512  ;;  %v1166_v36 = vsub.f32 %v1157_v63, %v1164_v34  ;;  %v1167_v40 = vmul.f32 1.442695, %v1165_v37 }
 0x355   : > { %v1044_v38 = vsel %vm847_vm0, %v4513_v35, 0.0 }
 0x356   : > { %v1169_v39 = vmul.f32 1.442695, %v1166_v36  ;;  %1045 = vadd.xlane.f32.xlu2 %v1044_v38 }
 0x358   : > { %4514 = vpow2.f32 %v1169_v39 }
 0x359   : > { %v1291_v41 = vpop.xlane.xlu2 %1290  ;;  %4516 = vpow2.f32 %v1167_v40 }
 0x35a   : > { %v1295_v42 = vsub.f32 %v1259_v5, %v1291_v41  ;;  %v4262_v41 = vld [vmem:[%s4734_s16 + $0x8] sm:$0xff] }
 0x35b   : > { %v1294_v50 = vpop.xlane.xlu1 %1293  ;;  %1425 = vmatpush.bf16.msrb.mxu2 %v4262_v41 }
 0x35c   : > { %v1297_v43 = vmul.f32 1.442695, %v1295_v42  ;;  %v1296_v54 = vsub.f32 %v4872_v7, %v1294_v50  ;;  %v4261_v42 = vld [vmem:[%s4734_s16] sm:$0xff] }
 0x35e   : > { %v4892_v44 = vpop.eup %4514  ;;  %4518 = vpow2.f32 %v1297_v43  ;;  %v1299_v55 = vmul.f32 1.442695, %v1296_v54 }
 0x35f   : > { %v1174_v45 = vsel %vm847_vm0, %v4892_v44, 0.0  ;;  %v4517_v46 = vpop.eup %4516  ;;  %1426 = vmatpush.bf16.msrb.mxu2 %v4261_v42 }
 0x360   : > { %1175 = vadd.xlane.f32.xlu0 %v1174_v45  ;;  %v1171_v49 = vsel %vm847_vm0, %v4517_v46, 0.0  ;;  %4520 = vpow2.f32 %v1299_v55 }
 0x364   : > { %v4896_v47 = vpop.eup %4518 }
 0x365   : > { %v1301_v48 = vsel %vm847_vm0, %v4896_v47, 0.0 }
 0x366   : > { %1302 = vadd.xlane.f32.xlu1 %v1301_v48  ;;  %v4521_v56 = vpop.eup %4520 }
 0x367   : > { %v1304_v57 = vsel %vm847_vm0, %v4521_v56, 0.0 }
 0x368   : > { %1172 = vadd.xlane.f32.xlu0 %v1171_v49 }
 0x36e   : > { %4461 = vrot.lane.b32.xlu2 %v4455_v10, %s4606_s30 }
 0x373   : > { %v4457_v51 = vpop.permute.xlu1 %4456 }
 0x374   : > { %v4458_v52 = vunpack.i.l.bf16 %v4457_v51  ;;  %v4459_v53 = vunpack.i.h.bf16 %v4457_v51 }
 0x376   : > { %942 = vmatpush.msra.mxu3 %v4458_v52 }
 0x378   : > { %968 = vmatpush.msrb.mxu3 %v4459_v53 }
 0x37c   : > { %4466 = vrot.lane.b32.xlu0 %v4455_v10, %s4607_s20 }
 0x384   : > { %1311 = vrot.lane.b32.xlu0 %v4824_v28, %s4608_s14 }
 0x38c   : > { %1337 = vrot.lane.b32.xlu0 %v4827_v31, %s4608_s14 }
 0x397   : > { %1305 = vadd.xlane.f32.xlu2 %v1304_v57 }
 0x3a3   : > { %v913_v58 = vpop.xlane.xlu0 %912 }
 0x3a4   : > { %4522 = vrcp.f32 %v913_v58 }
 0x3aa   : > { %v4523_v59 = vpop.eup %4522 }
 0x3ab   : > { %v919_v60 = vmul.f32 %v4523_v59, %v4879_v18  ;;  %v4490_v59 = vld [vmem:[%s5309_s15] ss:$0 sm:$0xff] }
 0x3ac   : > { %v916_v61 = vpop.xlane.xlu2 %915 }
 0x3ad   : > { %4524 = vrcp.f32 %v916_v61  ;;  %3565 = vmatmul.msk.f32.vlgmr.msra.gmra.mxu3 %vm847_vm0, %v919_v60 }
 0x3b3   : > { %v4525_v28 = vpop.eup %4524 }
 0x3b4   : > { %v920_v62 = vmul.f32 %v4525_v28, %v4883_v22 }
 0x3b6   : > { %3566 = vmatmul.msk.f32.vlgmr.msrb.gmra.mxu3 %vm847_vm0, %v920_v62 }
 0x3c1   : > { %v1043_v31 = vpop.xlane.xlu0 %1042 }
 0x3c2   : > { %4526 = vrcp.f32 %v1043_v31 }
 0x3c8   : > { %v4527_v0 = vpop.eup %4526 }
 0x3c9   : > { %v1046_v63 = vpop.xlane.xlu2 %1045  ;;  %v1049_v7 = vmul.f32 %v4527_v0, %v4887_v27 }
 0x3ca   : > { %4528 = vrcp.f32 %v1046_v63 }
 0x3d0   : > { %v4529_v1 = vpop.eup %4528 }
 0x3d1   : > { %v4462_v3 = vpop.permute.xlu2 %4461  ;;  %v1050_v8 = vmul.f32 %v4529_v1, %v4513_v35 }
 0x3d2   : > { %v4464_v5 = vunpack.i.h.bf16 %v4462_v3  ;;  %v4463_v6 = vunpack.i.l.bf16 %v4462_v3 }
 0x3d3   : > { %v1176_v9 = vpop.xlane.xlu0 %1175 }
 0x3d4   : > { %1072 = vmatpush.msra.mxu3 %v4463_v6  ;;  %1098 = vmatpush.msra.mxu1 %v4464_v5  ;;  %4530 = vrcp.f32 %v1176_v9 }
 0x3d5   : > { %3571 = vmatmul.msk.f32.vlgmr.msra.gmra.mxu3 %vm847_vm0, %v1049_v7  ;;  %3572 = vmatmul.msk.f32.vlgmr.msra.gmra.mxu1 %vm847_vm0, %v1050_v8 }
 0x3d9   : > { %v1303_v13 = vpop.xlane.xlu1 %1302 }
 0x3da   : > { %v4531_v11 = vpop.eup %4530 }
 0x3db   : > { %v1173_v10 = vpop.xlane.xlu0 %1172  ;;  %v1180_v19 = vmul.f32 %v4531_v11, %v4892_v44 }
 0x3dc   : > { %4532 = vrcp.f32 %v1173_v10 }
 0x3dd   : > { %4534 = vrcp.f32 %v1303_v13 }
 0x3e2   : > { %v4533_v14 = vpop.eup %4532 }
 0x3e3   : > { %v1179_v21 = vmul.f32 %v4533_v14, %v4517_v46  ;;  %v4535_v22 = vpop.eup %4534 }
 0x3e4   : > { %v1309_v24 = vmul.f32 %v4535_v22, %v4896_v47 }
 0x3ee   : > { %v4467_v16 = vpop.permute.xlu0 %4466 }
 0x3ef   : > { %v4469_v17 = vunpack.i.h.bf16 %v4467_v16  ;;  %v4468_v18 = vunpack.i.l.bf16 %v4467_v16 }
 0x3f1   : > { %1202 = vmatpush.msrb.mxu3 %v4468_v18  ;;  %1228 = vmatpush.msrb.mxu1 %v4469_v17 }
 0x3f2   : > { %3577 = vmatmul.msk.f32.vlgmr.msrb.gmra.mxu3 %vm847_vm0, %v1179_v21  ;;  %3578 = vmatmul.msk.f32.vlgmr.msrb.gmra.mxu1 %vm847_vm0, %v1180_v19 }
 0x3f6   : > { %v1312_v23 = vpop.permute.xlu0 %1311 }
 0x3f7   : > { %1332 = vmatpush.msra.mxu3 %v1312_v23 }
 0x3fa   : > { %3583 = vmatmul.msk.f32.vlgmr.msra.gmra.mxu3 %vm847_vm0, %v1309_v24 }
 0x3fe   : > { %v1338_v25 = vpop.permute.xlu0 %1337 }
 0x3ff   : > { %1358 = vmatpush.msra.mxu1 %v1338_v25  ;;  %v3660_v25 = vld [vmem:[%s4752_s1 + $0x80] sm:$0xf] }
 0x40a   : > { %v1306_v26 = vpop.xlane.xlu2 %1305 }
 0x40b   : > { %4536 = vrcp.f32 %v1306_v26  ;;  %v4287_v26 = vld [vmem:[%s4752_s1 + $0xbc] sm:$0xf0] }
 0x411   : > { %v4537_v15 = vpop.eup %4536 }
 0x412   : > { %v1310_v20 = vmul.f32 %v4537_v15, %v4521_v56  ;;  %v4279_v15 = vld [vmem:[%s4752_s1 + $0x84] sm:$0xf] }
 0x414   : > { %3584 = vmatmul.msk.f32.vlgmr.msra.gmra.mxu1 %vm847_vm0, %v1310_v20 }
 0x430   : > { %v944_v27 = vpop.f32.mrf.mxu3 }
 0x439   : > { %v970_v30 = vpop.f32.mrf.mxu3 }
 0x452   : > { %v1100_v32 = vpop.f32.mrf.mxu1 }
 0x458   : > { %v1074_v33 = vpop.f32.mrf.mxu3 }
 0x459   : > { %v4470_v34 = vpack.i.bf16 %v1100_v32, %v1074_v33  ;;  %v3662_v32 = vld [vmem:[%s4752_s1 + $0xc0] sm:$0xf0]  ;;  %v3668_v33 = vld [vmem:[%s4752_s1 + $0x88] sm:$0xf] }
 0x45b   : > { %4471 = vrot.lane.b32.xlu0 %v4470_v34, %s4609_s24  ;;  %v4288_v34 = vld [vmem:[%s4752_s1 + $0xc4] sm:$0xf0] }
 0x46f   : > { %v1230_v35 = vpop.f32.mrf.mxu1 }
 0x475   : > { %v1204_v36 = vpop.f32.mrf.mxu3 }
 0x476   : > { %v4475_v37 = vpack.i.bf16 %v1230_v35, %v1204_v36  ;;  %v3665_v35 = vor.u32 %v4279_v15, %v3662_v32  ;;  %v3669_v36 = vor.u32 %v4288_v34, %v3668_v33 }
 0x478   : > { %4476 = vrot.lane.b32.xlu1 %v4475_v37, %s4610_s27  ;;  %v4280_v37 = vld [vmem:[%s4752_s1 + $0x8c] sm:$0xf]  ;;  %1775 = vmatpush.bf16.msrb.mxu3 %v3665_v35  ;;  %s5312_s27 = sld [smem:[#allocation12_spill]] (!%p4250_p5) }
 0x479   : > { %1789 = vmatpush.bf16.msrb.mxu1 %v3669_v36 }
 0x47d   : > { %v1334_v38 = vpop.f32.mrf.mxu3 }
 0x491   : > { %v1360_v39 = vpop.f32.mrf.mxu1 }
 0x492   : > { %v4480_v40 = vpack.i.bf16 %v1360_v39, %v1334_v38  ;;  %v3670_v38 = vld [vmem:[%s4752_s1 + $0xc8] sm:$0xf0] }
 0x493   : > { %v3673_v42 = vor.u32 %v4280_v37, %v3670_v38 }
 0x494   : > { %4481 = vrot.lane.b32.xlu0 %v4480_v40, %s4611_s21 }
 0x495   : > { %1803 = vmatpush.bf16.msra.mxu2 %v3673_v42 }
 0x4cd   : > { %v4472_v43 = vpop.permute.xlu0 %4471 }
 0x4ce   : > { %v4474_v45 = vunpack.i.h.bf16 %v4472_v43  ;;  %v4473_v46 = vunpack.i.l.bf16 %v4472_v43  ;;  %v3596_v43 = vld [vmem:[%s4752_s1] sm:$0xf] }
 0x4d0   : > { %v1388_v50 = vsel %vm847_vm0, %v970_v30, %v4474_v45  ;;  %v1387_v51 = vsel %vm847_vm0, %v944_v27, %v4473_v46  ;;  %v3661_v30 = vor.u32 %v4287_v26, %v3660_v25  ;;  %v4263_v45 = vld [vmem:[%s4752_s1 + $0x4] sm:$0xf] }
 0x4d2   : > { %1761 = vmatpush.bf16.msra.mxu0 %v3661_v30  ;;  %v3622_v30 = vld [vmem:[%s4752_s1 + $0x58] sm:$0xf0] }
 0x4ea   : > { %v4477_v44 = vpop.permute.xlu1 %4476 }
 0x4eb   : > { %v4479_v47 = vunpack.i.h.bf16 %v4477_v44  ;;  %v4478_v48 = vunpack.i.l.bf16 %v4477_v44  ;;  %v4271_v44 = vld [vmem:[%s4752_s1 + $0x3c] sm:$0xf0] }
 0x4ed   : > { %v1391_v54 = vsel %vm1389_vm2, %v1388_v50, %v4479_v47  ;;  %v1390_v55 = vsel %vm1389_vm2, %v1387_v51, %v4478_v48  ;;  %v3597_v48 = vor.u32 %v4271_v44, %v3596_v43  ;;  %v3604_v50 = vld [vmem:[%s4752_s1 + $0x8] sm:$0xf] }
 0x4ef   : > { %1762 = vmatpush.bf16.msra.mxu0 %v3597_v48 }
 0x506   : > { %v4482_v49 = vpop.permute.xlu0 %4481 }
 0x507   : > { %v4484_v52 = vunpack.i.h.bf16 %v4482_v49  ;;  %v4483_v53 = vunpack.i.l.bf16 %v4482_v49  ;;  %v3598_v49 = vld [vmem:[%s4752_s1 + $0x40] sm:$0xf0] }
 0x509   : > { %v1394_v56 = vsel %vm1392_vm3, %v1391_v54, %v4484_v52  ;;  %v1393_v57 = vsel %vm1392_vm3, %v1390_v55, %v4483_v53  ;;  %v3601_v52 = vor.u32 %v4263_v45, %v3598_v49  ;;  %v4272_v53 = vld [vmem:[%s4752_s1 + $0x44] sm:$0xf0]  ;;  %v4264_v54 = vld [vmem:[%s4752_s1 + $0xc] sm:$0xf] }
 0x50a   : > { %v1395_v58 = vpack.c.bf16 %v1394_v56, %v1393_v57  ;;  %v3606_v55 = vld [vmem:[%s4752_s1 + $0x48] sm:$0xf0] }
 0x50b   : > { %1776 = vmatpush.bf16.msrb.mxu3 %v3601_v52 }
 0x50c   : > { %3593 = vmatmul.msk.bf16.vlgmr.msrb.gmra.mxu2 %vm699_vm1, %v1395_v58  ;;  %v3605_v58 = vor.u32 %v4272_v53, %v3604_v50  ;;  %v4492_v53 = vld [vmem:[%s665_s18] ss:$0 sm:$0xff] }
 0x50e   : > { %1790 = vmatpush.bf16.msrb.mxu1 %v3605_v58  ;;  %v4291_v58 = vld [vmem:[%s4752_s1 + $0xdc] sm:$0xf0] }
 0x58f   : > { %v1428_v60 = vpop.f32.mrf.mxu2 }
 0x590   : > { %v1429_v61 = vadd.f32 %v4490_v59, %v1428_v60 }
 0x592   : > { %v4930_v28 = vadd.f32 %v1429_v61, %v4776_v2  ;;  %v3676_v61 = vld [vmem:[%s4752_s1 + $0x90] sm:$0xf] }
 0x594   : > { %v1437_v62 = vsel %vm699_vm1, %v4930_v28, 0.0 }
 0x595   : > { %1438 = vadd.xlane.f32.xlu0 %v1437_v62  ;;  %v4289_v62 = vld [vmem:[%s4752_s1 + $0xcc] sm:$0xf0] }
 0x597   : > { %v1430_v31 = vpop.f32.mrf.mxu2 }
 0x598   : > { %v1431_v63 = vadd.f32 %v4490_v59, %v1430_v31  ;;  %v3609_v59 = vor.u32 %v4264_v54, %v3606_v55  ;;  %v4281_v31 = vld [vmem:[%s4752_s1 + $0x94] sm:$0xf] }
 0x59a   : > { %v4935_v0 = vadd.f32 %v1431_v63, %v4780_v4  ;;  %1804 = vmatpush.bf16.msra.mxu2 %v3609_v59  ;;  %v4283_v59 = vld [vmem:[%s4752_s1 + $0xa4] sm:$0xf] }
 0x59c   : > { %v1440_v1 = vsel %vm699_vm1, %v4935_v0, 0.0 }
 0x59d   : > { %1441 = vadd.xlane.f32.xlu2 %v1440_v1  ;;  %v3677_v1 = vor.u32 %v4289_v62, %v3676_v61 }
 0x59f   : > { %1817 = vmatpush.bf16.msrb.mxu0 %v3677_v1  ;;  %v3702_v1 = vld [vmem:[%s4752_s1 + $0xe8] sm:$0xf0] }
 0x608   : > { %v1439_v3 = vpop.xlane.xlu0 %1438 }
 0x609   : > { %v1443_v5 = vmul.f32 %v1439_v3, %v4784_v12  ;;  %v3678_v3 = vld [vmem:[%s4752_s1 + $0xd0] sm:$0xf0] }
 0x60b   : > { %v4941_v6 = vsub.f32 %v4930_v28, %v1443_v5  ;;  %v3684_v5 = vld [vmem:[%s4752_s1 + $0x98] sm:$0xf] }
 0x60d   : > { %v1447_v2 = vmul.f32 %v4941_v6, %v4941_v6 }
 0x60f   : > { %v1449_v7 = vsel %vm699_vm1, %v1447_v2, 0.0 }
 0x610   : > { %v1442_v8 = vpop.xlane.xlu2 %1441  ;;  %1450 = vadd.xlane.f32.xlu2 %v1449_v7  ;;  %v3681_v7 = vor.u32 %v4281_v31, %v3678_v3  ;;  %v4292_v31 = vld [vmem:[%s4752_s1 + $0xe4] sm:$0xf0] }
 0x611   : > { %v1444_v4 = vmul.f32 %v1442_v8, %v4784_v12  ;;  %v4290_v8 = vld [vmem:[%s4752_s1 + $0xd4] sm:$0xf0] }
 0x612   : > { %1831 = vmatpush.bf16.msra.mxu3 %v3681_v7  ;;  %v3628_v7 = vld [vmem:[%s4752_s1 + $0x20] sm:$0xf] }
 0x613   : > { %v4948_v9 = vsub.f32 %v4935_v0, %v1444_v4  ;;  %v4282_v4 = vld [vmem:[%s4752_s1 + $0x9c] sm:$0xf] }
 0x615   : > { %v1448_v10 = vmul.f32 %v4948_v9, %v4948_v9 }
 0x617   : > { %v1452_v11 = vsel %vm699_vm1, %v1448_v10, 0.0  ;;  %v3686_v10 = vld [vmem:[%s4752_s1 + $0xd8] sm:$0xf0] }
 0x618   : > { %1453 = vadd.xlane.f32.xlu1 %v1452_v11  ;;  %v3685_v11 = vor.u32 %v4290_v8, %v3684_v5  ;;  %v4275_v8 = vld [vmem:[%s4752_s1 + $0x5c] sm:$0xf0] }
 0x61a   : > { %1845 = vmatpush.bf16.msra.mxu1 %v3685_v11  ;;  %v4267_v11 = vld [vmem:[%s4752_s1 + $0x24] sm:$0xf] }
 0x683   : > { %v1451_v13 = vpop.xlane.xlu2 %1450 }
 0x684   : > { %v1455_v14 = vmul.f32 %v1451_v13, %v4800_v29  ;;  %v3689_v13 = vor.u32 %v4282_v4, %v3686_v10 }
 0x686   : > { %4538 = vrsqrt.f32 %v1455_v14  ;;  %vm1469_vm4 = vcmp.eq.f32.partialorder %v1455_v14, inf  ;;  %v1472_v40 = vand.u32 2147483648, %v1455_v14  ;;  %vm1471_vm5 = vcmp.eq.f32.partialorder %v1455_v14, 0.0  ;;  %1859 = vmatpush.bf16.msrb.mxu2 %v3689_v13  ;;  %v3630_v13 = vld [vmem:[%s4752_s1 + $0x60] sm:$0xf0] }
 0x68b   : > { %v1454_v16 = vpop.xlane.xlu1 %1453 }
 0x68c   : > { %v4539_v17 = vpop.eup %4538  ;;  %v4955_v18 = vmul.f32 %v1454_v16, %v4800_v29  ;;  %v4273_v16 = vld [vmem:[%s4752_s1 + $0x4c] sm:$0xf0] }
 0x68d   : > { %v1463_v19 = vmul.f32 %v4539_v17, %v1455_v14 }
 0x68e   : > { %4540 = vrsqrt.f32 %v4955_v18  ;;  %vm1481_vm6 = vcmp.eq.f32.partialorder %v4955_v18, inf  ;;  %vm1483_vm7 = vcmp.eq.f32.partialorder %v4955_v18, 0.0  ;;  %v1484_v63 = vand.u32 2147483648, %v4955_v18 }
 0x68f   : > { %v1464_v21 = vmul.f32 %v4539_v17, %v1463_v19 }
 0x691   : > { %v1465_v22 = vmul.f32 0.5, %v1464_v21 }
 0x693   : > { %v1466_v23 = vsub.f32 1.5, %v1465_v22  ;;  %v3614_v22 = vld [vmem:[%s4752_s1 + $0x50] sm:$0xf0] }
 0x694   : > { %v4541_v24 = vpop.eup %4540 }
 0x695   : > { %v1467_v20 = vmul.f32 %v4539_v17, %v1466_v23  ;;  %v1475_v27 = vmul.f32 %v4541_v24, %v4955_v18  ;;  %v4265_v17 = vld [vmem:[%s4752_s1 + $0x14] sm:$0xf]  ;;  %v3620_v23 = vld [vmem:[%s4752_s1 + $0x18] sm:$0xf] }
 0x696   : > { %v3617_v15 = vor.u32 %v4265_v17, %v3614_v22  ;;  %v4268_v17 = vld [vmem:[%s4752_s1 + $0x2c] sm:$0xf]  ;;  %v3633_v22 = vor.u32 %v4267_v11, %v3630_v13 }
 0x697   : > { %v1468_v39 = vmul.f32 %v1467_v20, %v1455_v14  ;;  %v1476_v41 = vmul.f32 %v4541_v24, %v1475_v27  ;;  %v4266_v27 = vld [vmem:[%s4752_s1 + $0x1c] sm:$0xf]  ;;  %v4304_v11 = vld [vmem:[%s4767_s0 + $0x48] sm:$0xff] }
 0x698   : > { %v3625_v34 = vor.u32 %v4266_v27, %v3622_v30  ;;  %1832 = vmatpush.bf16.msra.mxu3 %v3617_v15  ;;  %v4285_v15 = vld [vmem:[%s4752_s1 + $0xb4] sm:$0xf]  ;;  %v3716_v27 = vld [vmem:[%s4752_s1 + $0xb8] sm:$0xf]  ;;  %v4320_v13 = vld [vmem:[%s4767_s0 + $0xc8] sm:$0xff] }
 0x699   : > { %v1470_v46 = vsel %vm1469_vm4, %v1455_v14, %v1468_v39  ;;  %v1477_v47 = vmul.f32 0.5, %v1476_v41  ;;  %v3612_v14 = vld [vmem:[%s4752_s1 + $0x10] sm:$0xf]  ;;  %v4491_v41 = vld [vmem:[%s5310_s17] ss:$0 sm:$0xff] }
 0x69a   : > { %v1473_v51 = vsel %vm1471_vm5, %v1472_v40, %v1470_v46  ;;  %v3613_v21 = vor.u32 %v4273_v16, %v3612_v14  ;;  %1860 = vmatpush.bf16.msrb.mxu2 %v3625_v34  ;;  %v1460_v49 = vmul.f32 %v4491_v41, %v4941_v6  ;;  %v1461_v52 = vmul.f32 %v4491_v41, %v4948_v9  ;;  %v3700_v9 = vld [vmem:[%s4752_s1 + $0xa8] sm:$0xf]  ;;  %v4294_v30 = vld [vmem:[%s4752_s1 + $0xf4] sm:$0xf0] }
 0x69b   : > { %v4975_v56 = vadd.f32 1e-06, %v1473_v51  ;;  %v1478_v57 = vsub.f32 1.5, %v1477_v47  ;;  %v3701_v4 = vor.u32 %v4292_v31, %v3700_v9  ;;  %v3636_v14 = vld [vmem:[%s4752_s1 + $0x28] sm:$0xf]  ;;  %v4315_v9 = vld [vmem:[%s4767_s0 + $0xa0] sm:$0xff] }
 0x69c   : > { %1818 = vmatpush.bf16.msrb.mxu0 %v3613_v21  ;;  %v4276_v16 = vld [vmem:[%s4752_s1 + $0x64] sm:$0xf0]  ;;  %v3629_v21 = vor.u32 %v4275_v8, %v3628_v7  ;;  %v3652_v41 = vld [vmem:[%s4752_s1 + $0x38] sm:$0xf]  ;;  %v4313_v7 = vld [vmem:[%s4767_s0 + $0x90] sm:$0xff] }
 0x69d   : > { %4542 = vrcp.f32 %v4975_v56  ;;  %v1479_v60 = vmul.f32 %v4541_v24, %v1478_v57  ;;  %v4274_v24 = vld [vmem:[%s4752_s1 + $0x54] sm:$0xf0]  ;;  %v1499_v38 = vand.u32 2147483648, %v4975_v56  ;;  %vm1493_vm9 = vweird.f32 %v4975_v56  ;;  %v3692_v57 = vld [vmem:[%s4752_s1 + $0xa0] sm:$0xf]  ;;  %v4305_v8 = vld [vmem:[%s4767_s0 + $0x50] sm:$0xff] }
 0x69e   : > { %v3621_v20 = vor.u32 %v4274_v24, %v3620_v23  ;;  %v1497_v39 = vand.u32 2147483647, %v4975_v56  ;;  %v3693_v5 = vor.u32 %v4291_v58, %v3692_v57  ;;  %v3637_v23 = vor.u32 %v4276_v16, %v3636_v14  ;;  %v4316_v57 = vld [vmem:[%s4767_s0 + $0xa8] sm:$0xff]  ;;  %v4298_v31 = vld [vmem:[%s4767_s0 + $0x18] sm:$0xff]  ;;  %v4295_v14 = vld [vmem:[%s4767_s0] sm:$0xff] }
 0x69f   : > { %v1480_v2 = vmul.f32 %v1479_v60, %v4955_v18  ;;  %v1500_v44 = vor.u32 1.1754944e-38, %v1499_v38  ;;  %v3694_v60 = vld [vmem:[%s4752_s1 + $0xe0] sm:$0xf0]  ;;  %v4308_v58 = vld [vmem:[%s4767_s0 + $0x68] sm:$0xff] }
 0x6a0   : > { %1846 = vmatpush.bf16.msra.mxu1 %v3621_v20  ;;  %vm1498_vm11 = vcmp.eq.f32.partialorder %v1497_v39, 8.507059e+37  ;;  %v3710_v20 = vld [vmem:[%s4752_s1 + $0xf0] sm:$0xf0]  ;;  %v4311_v16 = vld [vmem:[%s4767_s0 + $0x80] sm:$0xff] }
 0x6a1   : > { %v1482_v19 = vsel %vm1481_vm6, %v4955_v18, %v1480_v2  ;;  %v3697_v2 = vor.u32 %v4283_v59, %v3694_v60  ;;  %v4269_v39 = vld [vmem:[%s4752_s1 + $0x34] sm:$0xf]  ;;  %v4324_v59 = vld [vmem:[%s4767_s0 + $0xe8] sm:$0xff]  ;;  %v4299_v60 = vld [vmem:[%s4767_s0 + $0x20] sm:$0xff] }
 0x6a2   : > { %v1485_v26 = vsel %vm1483_vm7, %v1484_v63, %v1482_v19  ;;  %v4284_v63 = vld [vmem:[%s4752_s1 + $0xac] sm:$0xf] }
 0x6a3   : > { %v4543_v25 = vpop.eup %4542  ;;  %v1487_v33 = vadd.f32 1e-06, %v1485_v26  ;;  %v3705_v10 = vor.u32 %v4284_v63, %v3702_v1  ;;  %v3638_v19 = vld [vmem:[%s4752_s1 + $0x68] sm:$0xf0]  ;;  %v4293_v26 = vld [vmem:[%s4752_s1 + $0xec] sm:$0xf0] }
 0x6a4   : > { %v1489_v32 = vmul.f32 %v4543_v25, %v4975_v56  ;;  %vm1494_vm8 = vweird.f32 %v4543_v25  ;;  %v3641_v24 = vor.u32 %v4268_v17, %v3638_v19  ;;  %v4314_v63 = vld [vmem:[%s4767_s0 + $0x98] sm:$0xff] }
 0x6a5   : > { %4544 = vrcp.f32 %v1487_v33  ;;  %vm1495_vm10 = vmor %vm1493_vm9, %vm1494_vm8  ;;  %v1514_v45 = vand.u32 2147483648, %v1487_v33  ;;  %v1512_v47 = vand.u32 2147483647, %v1487_v33  ;;  %vm1508_vm13 = vweird.f32 %v1487_v33  ;;  %v4306_v1 = vld [vmem:[%s4767_s0 + $0x58] sm:$0xff] }
 0x6a6   : > { %v1490_v35 = vsub.f32 1.0, %v1489_v32  ;;  %v4286_v32 = vld [vmem:[%s4752_s1 + $0xbc] sm:$0xf] }
 0x6a7   : > { %v1515_v51 = vor.u32 1.1754944e-38, %v1514_v45  ;;  %vm1513_vm15 = vcmp.eq.f32.partialorder %v1512_v47, 8.507059e+37  ;;  %v4334_v17 = vld [vmem:[%s4767_s0 + $0x138] sm:$0xff] }
 0x6a8   : > { %v1491_v36 = vmul.f32 %v4543_v25, %v1490_v35  ;;  %v3713_v35 = vor.u32 %v4285_v15, %v3710_v20  ;;  %v4350_v19 = vld [vmem:[%s4767_s0 + $0x1b8] sm:$0xff]  ;;  %v4341_v15 = vld [vmem:[%s4767_s0 + $0x170] sm:$0xff] }
 0x6a9   : > { %v4357_v20 = vld [vmem:[%s4767_s0 + $0x1f0] sm:$0xff] }
 0x6aa   : > { %v1492_v18 = vadd.f32 %v4543_v25, %v1491_v36  ;;  %v3644_v36 = vld [vmem:[%s4752_s1 + $0x30] sm:$0xf] }
 0x6ab   : > { %v4545_v37 = vpop.eup %4544 }
 0x6ac   : > { %v1504_v40 = vmul.f32 %v4545_v37, %v1487_v33  ;;  %v1496_v42 = vsel %vm1495_vm10, %v4543_v25, %v1492_v18  ;;  %vm1509_vm12 = vweird.f32 %v4545_v37  ;;  %v3708_v25 = vld [vmem:[%s4752_s1 + $0xb0] sm:$0xf]  ;;  %v3718_v33 = vld [vmem:[%s4752_s1 + $0xf8] sm:$0xf0] }
 0x6ad   : > { %v1501_v48 = vsel %vm1498_vm11, %v1500_v44, %v1496_v42  ;;  %vm1510_vm14 = vmor %vm1508_vm13, %vm1509_vm12  ;;  %v3709_v34 = vor.u32 %v4293_v26, %v3708_v25  ;;  %v4277_v18 = vld [vmem:[%s4752_s1 + $0x6c] sm:$0xf0]  ;;  %v3721_v38 = vor.u32 %v4286_v32, %v3718_v33  ;;  %v4278_v42 = vld [vmem:[%s4752_s1 + $0x74] sm:$0xf0] }
 0x6ae   : > { %v1505_v43 = vsub.f32 1.0, %v1504_v40  ;;  %v1502_v54 = vmul.f32 %v1501_v48, %v1460_v49  ;;  %v3646_v40 = vld [vmem:[%s4752_s1 + $0x70] sm:$0xf0]  ;;  %v3654_v44 = vld [vmem:[%s4752_s1 + $0x78] sm:$0xf0]  ;;  %v3645_v45 = vor.u32 %v4277_v18, %v3644_v36  ;;  %v3653_v47 = vor.u32 %v4278_v42, %v3652_v41  ;;  %v4331_v32 = vld [vmem:[%s4767_s0 + $0x120] sm:$0xff] }
 0x6af   : > { %v4302_v49 = vld [vmem:[%s4767_s0 + $0x38] sm:$0xff]  ;;  %v4333_v25 = vld [vmem:[%s4767_s0 + $0x130] sm:$0xff]  ;;  %v4347_v33 = vld [vmem:[%s4767_s0 + $0x1a0] sm:$0xff] }
 0x6b0   : > { %v1506_v46 = vmul.f32 %v4545_v37, %v1505_v43  ;;  %v1521_v61 = vadd.f32 %v4492_v53, %v1502_v54  ;;  %v4270_v43 = vld [vmem:[%s4752_s1 + $0x3c] sm:$0xf]  ;;  %v4317_v54 = vld [vmem:[%s4767_s0 + $0xb0] sm:$0xff] }
 0x6b1   : > { %v3657_v48 = vor.u32 %v4270_v43, %v3654_v44  ;;  %v4349_v26 = vld [vmem:[%s4767_s0 + $0x1b0] sm:$0xff]  ;;  %v4330_v36 = vld [vmem:[%s4767_s0 + $0x118] sm:$0xff]  ;;  %v4328_v43 = vld [vmem:[%s4767_s0 + $0x108] sm:$0xff] }
 0x6b2   : > { %v1507_v50 = vadd.f32 %v4545_v37, %v1506_v46  ;;  %v3649_v46 = vor.u32 %v4269_v39, %v3646_v40  ;;  %v4346_v18 = vld [vmem:[%s4767_s0 + $0x198] sm:$0xff]  ;;  %v4329_v39 = vld [vmem:[%s4767_s0 + $0x110] sm:$0xff]  ;;  %v4344_v44 = vld [vmem:[%s4767_s0 + $0x188] sm:$0xff] }
 0x6b3   : > { %v4345_v40 = vld [vmem:[%s4767_s0 + $0x190] sm:$0xff]  ;;  %v4338_v41 = vld [vmem:[%s4767_s0 + $0x158] sm:$0xff] }
 0x6b4   : > { %v1511_v55 = vsel %vm1510_vm14, %v4545_v37, %v1507_v50  ;;  %v3717_v37 = vor.u32 %v4294_v30, %v3716_v27  ;;  %v4318_v50 = vld [vmem:[%s4767_s0 + $0xb8] sm:$0xff]  ;;  %v4332_v27 = vld [vmem:[%s4767_s0 + $0x128] sm:$0xff] }
 0x6b5   : > { %v1516_v6 = vsel %vm1513_vm15, %v1515_v51, %v1511_v55  ;;  %v4310_v51 = vld [vmem:[%s4767_s0 + $0x78] sm:$0xff]  ;;  %v4309_v55 = vld [vmem:[%s4767_s0 + $0x70] sm:$0xff]  ;;  %v4348_v30 = vld [vmem:[%s4767_s0 + $0x1a8] sm:$0xff] }
 0x6b6   : > { %v1517_v56 = vmul.f32 %v1516_v6, %v1461_v52  ;;  %v4326_v52 = vld [vmem:[%s4767_s0 + $0xf8] sm:$0xff]  ;;  %v4325_v6 = vld [vmem:[%s4767_s0 + $0xf0] sm:$0xff] }
 0x6b7   : > { %v4354_v42 = vld [vmem:[%s4767_s0 + $0x1d8] sm:$0xff] }
 0x6b8   : > { %v1522_v62 = vadd.f32 %v4492_v53, %v1517_v56  ;;  %v4301_v53 = vld [vmem:[%s4767_s0 + $0x30] sm:$0xff]  ;;  %v4300_v56 = vld [vmem:[%s4767_s0 + $0x28] sm:$0xff] }
 0x6ba   : > { %v5027_v3 = vpack.c.bf16 %v1522_v62, %v1521_v61  ;;  %v4307_v61 = vld [vmem:[%s4767_s0 + $0x60] sm:$0xff] }
 0x6bb   : > { %v4323_v62 = vld [vmem:[%s4767_s0 + $0xe0] sm:$0xff] }
 0x6bc   : > { %3722 = vmatmul.msk.bf16.vlgmr.msra.gmra.mxu0 %vm699_vm1, %v5027_v3  ;;  %3723 = vmatmul.msk.bf16.vlgmr.msrb.gmra.mxu3 %vm699_vm1, %v5027_v3 }
 0x6bd   : > { %3724 = vmatmul.msk.bf16.vlgmr.msrb.gmra.mxu1 %vm699_vm1, %v5027_v3  ;;  %3725 = vmatmul.msk.bf16.vlgmr.msra.gmra.mxu2 %vm699_vm1, %v5027_v3 }
 0x6be   : > { %1873 = vmatpush.bf16.msra.mxu0 %v3693_v5  ;;  %1887 = vmatpush.bf16.msrb.mxu3 %v3697_v2  ;;  %v4322_v5 = vld [vmem:[%s4767_s0 + $0xd8] sm:$0xff]  ;;  %v4297_v2 = vld [vmem:[%s4767_s0 + $0x10] sm:$0xff] }
 0x6bf   : > { %1901 = vmatpush.bf16.msrb.mxu1 %v3701_v4  ;;  %1915 = vmatpush.bf16.msra.mxu2 %v3705_v10  ;;  %v4321_v4 = vld [vmem:[%s4767_s0 + $0xd0] sm:$0xff]  ;;  %v4296_v10 = vld [vmem:[%s4767_s0 + $0x8] sm:$0xff] }
 0x6c2   : > { %1874 = vmatpush.bf16.msra.mxu0 %v3629_v21  ;;  %1888 = vmatpush.bf16.msrb.mxu3 %v3633_v22  ;;  %v4303_v21 = vld [vmem:[%s4767_s0 + $0x40] sm:$0xff] }
 0x6c3   : > { %1902 = vmatpush.bf16.msrb.mxu1 %v3637_v23  ;;  %1916 = vmatpush.bf16.msra.mxu2 %v3641_v24  ;;  %v4319_v22 = vld [vmem:[%s4767_s0 + $0xc0] sm:$0xff]  ;;  %v4342_v23 = vld [vmem:[%s4767_s0 + $0x178] sm:$0xff] }
 0x6c4   : > { %v4358_v24 = vld [vmem:[%s4767_s0 + $0x1f8] sm:$0xff] }
 0x6cc   : > { %3726 = vmatmul.msk.bf16.vlgmr.msrb.gmra.mxu0 %vm699_vm1, %v5027_v3  ;;  %3727 = vmatmul.msk.bf16.vlgmr.msra.gmra.mxu3 %vm699_vm1, %v5027_v3 }
 0x6cd   : > { %3728 = vmatmul.msk.bf16.vlgmr.msra.gmra.mxu1 %vm699_vm1, %v5027_v3  ;;  %3729 = vmatmul.msk.bf16.vlgmr.msrb.gmra.mxu2 %vm699_vm1, %v5027_v3 }
 0x6ce   : > { %1929 = vmatpush.bf16.msrb.mxu0 %v3709_v34  ;;  %1943 = vmatpush.bf16.msra.mxu3 %v3713_v35  ;;  %v4340_v34 = vld [vmem:[%s4767_s0 + $0x168] sm:$0xff] }
 0x6cf   : > { %1957 = vmatpush.bf16.msra.mxu1 %v3717_v37  ;;  %1971 = vmatpush.bf16.msrb.mxu2 %v3721_v38  ;;  %v4356_v35 = vld [vmem:[%s4767_s0 + $0x1e8] sm:$0xff]  ;;  %v4339_v37 = vld [vmem:[%s4767_s0 + $0x160] sm:$0xff] }
 0x6d0   : > { %v4355_v38 = vld [vmem:[%s4767_s0 + $0x1e0] sm:$0xff] }
 0x6d2   : > { %1930 = vmatpush.bf16.msrb.mxu0 %v3645_v45  ;;  %1944 = vmatpush.bf16.msra.mxu3 %v3649_v46  ;;  %v4337_v45 = vld [vmem:[%s4767_s0 + $0x150] sm:$0xff] }
 0x6d3   : > { %1958 = vmatpush.bf16.msra.mxu1 %v3653_v47  ;;  %1972 = vmatpush.bf16.msrb.mxu2 %v3657_v48  ;;  %v4353_v46 = vld [vmem:[%s4767_s0 + $0x1d0] sm:$0xff]  ;;  %v4327_v47 = vld [vmem:[%s4767_s0 + $0x100] sm:$0xff] }
 0x6d4   : > { %v4343_v48 = vld [vmem:[%s4767_s0 + $0x180] sm:$0xff] }
 0x6dc   : > { %3730 = vmatmul.msk.bf16.vlgmr.msra.gmra.mxu0 %vm699_vm1, %v5027_v3  ;;  %3731 = vmatmul.msk.bf16.vlgmr.msrb.gmra.mxu3 %vm699_vm1, %v5027_v3 }
 0x6dd   : > { %3732 = vmatmul.msk.bf16.vlgmr.msrb.gmra.mxu1 %vm699_vm1, %v5027_v3  ;;  %3733 = vmatmul.msk.bf16.vlgmr.msra.gmra.mxu2 %vm699_vm1, %v5027_v3 }
 0x6de   : > { %3055 = vmatpush.bf16.msra.mxu0 %v4302_v49  ;;  %3083 = vmatpush.bf16.msrb.mxu1 %v4318_v50  ;;  %v4336_v49 = vld [vmem:[%s4767_s0 + $0x148] sm:$0xff] }
 0x6df   : > { %3069 = vmatpush.bf16.msrb.mxu3 %v4310_v51  ;;  %3097 = vmatpush.bf16.msra.mxu2 %v4326_v52  ;;  %v4352_v50 = vld [vmem:[%s4767_s0 + $0x1c8] sm:$0xff]  ;;  %v4335_v51 = vld [vmem:[%s4767_s0 + $0x140] sm:$0xff] }
 0x6e0   : > { %v4351_v52 = vld [vmem:[%s4767_s0 + $0x1c0] sm:$0xff] }
 0x6e2   : > { %3056 = vmatpush.bf16.msra.mxu0 %v4301_v53  ;;  %3084 = vmatpush.bf16.msrb.mxu1 %v4317_v54  ;;  %v5150_v53 = vld [vmem:[%s4757_s6] sm:$0xff] }
 0x6e3   : > { %3070 = vmatpush.bf16.msrb.mxu3 %v4309_v55  ;;  %3098 = vmatpush.bf16.msra.mxu2 %v4325_v6  ;;  %v1560_v6 = vperm.slane %v5150_v53, 0 }
 0x6e6   : > { %3057 = vmatpush.bf16.msra.mxu0 %v4300_v56  ;;  %3085 = vmatpush.bf16.msrb.mxu1 %v4316_v57  ;;  %v1562_v56 = vperm.slane %v5150_v53, 2 }
 0x6e7   : > { %3071 = vmatpush.bf16.msrb.mxu3 %v4308_v58  ;;  %3099 = vmatpush.bf16.msra.mxu2 %v4324_v59 }
 0x6ea   : > { %3058 = vmatpush.bf16.msra.mxu0 %v4299_v60  ;;  %3086 = vmatpush.bf16.msrb.mxu1 %v4315_v9 }
 0x6eb   : > { %3072 = vmatpush.bf16.msrb.mxu3 %v4307_v61  ;;  %3100 = vmatpush.bf16.msra.mxu2 %v4323_v62  ;;  %v1561_v61 = vperm.slane %v5150_v53, 1 }
 0x6ec   : > { %3734 = vmatmul.msk.bf16.vlgmr.msrb.gmra.mxu0 %vm699_vm1, %v5027_v3  ;;  %3735 = vmatmul.msk.bf16.vlgmr.msra.gmra.mxu3 %vm699_vm1, %v5027_v3 }
 0x6ed   : > { %3736 = vmatmul.msk.bf16.vlgmr.msra.gmra.mxu1 %vm699_vm1, %v5027_v3  ;;  %3737 = vmatmul.msk.bf16.vlgmr.msrb.gmra.mxu2 %vm699_vm1, %v5027_v3  ;;  %v4312_v3 = vld [vmem:[%s4767_s0 + $0x88] sm:$0xff] }
 0x6ee   : > { %3059 = vmatpush.bf16.msra.mxu0 %v4298_v31  ;;  %3087 = vmatpush.bf16.msrb.mxu1 %v4314_v63  ;;  %v1563_v63 = vperm.slane %v5150_v53, 3 }
 0x6ef   : > { %3073 = vmatpush.bf16.msrb.mxu3 %v4306_v1  ;;  %3101 = vmatpush.bf16.msra.mxu2 %v4322_v5 }
 0x6f2   : > { %3060 = vmatpush.bf16.msra.mxu0 %v4297_v2  ;;  %3088 = vmatpush.bf16.msrb.mxu1 %v4313_v7 }
 0x6f3   : > { %3074 = vmatpush.bf16.msrb.mxu3 %v4305_v8  ;;  %3102 = vmatpush.bf16.msra.mxu2 %v4321_v4  ;;  %v4366_v4 = vld [vmem:[%s4767_s0 + $0x238] sm:$0xff] }
 0x6f6   : > { %3061 = vmatpush.bf16.msra.mxu0 %v4296_v10  ;;  %3089 = vmatpush.bf16.msrb.mxu1 %v4312_v3 }
 0x6f7   : > { %3075 = vmatpush.bf16.msrb.mxu3 %v4304_v11  ;;  %3103 = vmatpush.bf16.msra.mxu2 %v4320_v13  ;;  %v4382_v11 = vld [vmem:[%s4767_s0 + $0x2b8] sm:$0xff] }
 0x6fa   : > { %3062 = vmatpush.bf16.msra.mxu0 %v4295_v14  ;;  %3090 = vmatpush.bf16.msrb.mxu1 %v4311_v16 }
 0x6fb   : > { %3076 = vmatpush.bf16.msrb.mxu3 %v4303_v21  ;;  %3104 = vmatpush.bf16.msra.mxu2 %v4319_v22 }
 0x6fe   : > { %3111 = vmatpush.bf16.msrb.mxu0 %v4334_v17  ;;  %3139 = vmatpush.bf16.msra.mxu1 %v4350_v19 }
 0x6ff   : > { %3125 = vmatpush.bf16.msra.mxu3 %v4342_v23  ;;  %3153 = vmatpush.bf16.msrb.mxu2 %v4358_v24  ;;  %v4365_v23 = vld [vmem:[%s4767_s0 + $0x230] sm:$0xff] }
 0x702   : > { %3112 = vmatpush.bf16.msrb.mxu0 %v4333_v25  ;;  %3140 = vmatpush.bf16.msra.mxu1 %v4349_v26 }
 0x703   : > { %3126 = vmatpush.bf16.msra.mxu3 %v4341_v15  ;;  %3154 = vmatpush.bf16.msrb.mxu2 %v4357_v20  ;;  %v4381_v15 = vld [vmem:[%s4767_s0 + $0x2b0] sm:$0xff] }
 0x706   : > { %3113 = vmatpush.bf16.msrb.mxu0 %v4332_v27  ;;  %3141 = vmatpush.bf16.msra.mxu1 %v4348_v30  ;;  %v4374_v30 = vld [vmem:[%s4767_s0 + $0x278] sm:$0xff] }
 0x707   : > { %3127 = vmatpush.bf16.msra.mxu3 %v4340_v34  ;;  %3155 = vmatpush.bf16.msrb.mxu2 %v4356_v35  ;;  %v4390_v34 = vld [vmem:[%s4767_s0 + $0x2f8] sm:$0xff] }
 0x70a   : > { %3114 = vmatpush.bf16.msrb.mxu0 %v4331_v32  ;;  %3142 = vmatpush.bf16.msra.mxu1 %v4347_v33  ;;  %v1564_v33 = vperm.slane %v5150_v53, 4 }
 0x70b   : > { %3128 = vmatpush.bf16.msra.mxu3 %v4339_v37  ;;  %3156 = vmatpush.bf16.msrb.mxu2 %v4355_v38  ;;  %v4380_v37 = vld [vmem:[%s4767_s0 + $0x2a8] sm:$0xff] }
 0x70e   : > { %3115 = vmatpush.bf16.msrb.mxu0 %v4330_v36  ;;  %3143 = vmatpush.bf16.msra.mxu1 %v4346_v18  ;;  %v1566_v36 = vperm.slane %v5150_v53, 6  ;;  %v4364_v18 = vld [vmem:[%s4767_s0 + $0x228] sm:$0xff] }
 0x70f   : > { %3129 = vmatpush.bf16.msra.mxu3 %v4338_v41  ;;  %3157 = vmatpush.bf16.msrb.mxu2 %v4354_v42  ;;  %v4389_v42 = vld [vmem:[%s4767_s0 + $0x2f0] sm:$0xff] }
 0x712   : > { %3116 = vmatpush.bf16.msrb.mxu0 %v4329_v39  ;;  %3144 = vmatpush.bf16.msra.mxu1 %v4345_v40  ;;  %v4373_v39 = vld [vmem:[%s4767_s0 + $0x270] sm:$0xff] }
 0x713   : > { %3130 = vmatpush.bf16.msra.mxu3 %v4337_v45  ;;  %3158 = vmatpush.bf16.msrb.mxu2 %v4353_v46  ;;  %v4363_v45 = vld [vmem:[%s4767_s0 + $0x220] sm:$0xff]  ;;  %v1565_v46 = vperm.slane %v5150_v53, 5 }
 0x716   : > { %3117 = vmatpush.bf16.msrb.mxu0 %v4328_v43  ;;  %3145 = vmatpush.bf16.msra.mxu1 %v4344_v44 }
 0x717   : > { %3131 = vmatpush.bf16.msra.mxu3 %v4336_v49  ;;  %3159 = vmatpush.bf16.msrb.mxu2 %v4352_v50  ;;  %v4379_v49 = vld [vmem:[%s4767_s0 + $0x2a0] sm:$0xff]  ;;  %v1567_v50 = vperm.slane %v5150_v53, 7 }
 0x71a   : > { %3118 = vmatpush.bf16.msrb.mxu0 %v4327_v47  ;;  %3146 = vmatpush.bf16.msra.mxu1 %v4343_v48 }
 0x71b   : > { %3132 = vmatpush.bf16.msra.mxu3 %v4335_v51  ;;  %3160 = vmatpush.bf16.msrb.mxu2 %v4351_v52  ;;  %v4372_v52 = vld [vmem:[%s4767_s0 + $0x268] sm:$0xff] }
 0x739   : > { %v1764_v54 = vpop.f32.mrf.mxu0 }
 0x73a   : > { %v1792_v55 = vpop.f32.mrf.mxu1  ;;  %v1765_v58 = vadd.f32 %v1764_v54, %v1560_v6 }
 0x73b   : > { %v1793_v60 = vadd.f32 %v1792_v55, %v1562_v56 }
 0x73c   : > { %v1979_v5 = vmax.f32 %v1765_v58, 0.0  ;;  %v4362_v58 = vld [vmem:[%s4767_s0 + $0x218] sm:$0xff] }
 0x73d   : > { %v1981_v7 = vmax.f32 %v1793_v60, 0.0 }
 0x73f   : > { %v1778_v57 = vpop.f32.mrf.mxu3 }
 0x740   : > { %v1806_v59 = vpop.f32.mrf.mxu2  ;;  %v1779_v10 = vadd.f32 %v1778_v57, %v1561_v61 }
 0x741   : > { %v1766_v9 = vpop.f32.mrf.mxu0  ;;  %v1807_v13 = vadd.f32 %v1806_v59, %v1563_v63 }
 0x742   : > { %v1767_v62 = vadd.f32 %v1766_v9, %v1560_v6  ;;  %v1794_v31 = vpop.f32.mrf.mxu1  ;;  %v1980_v24 = vmax.f32 %v1779_v10, 0.0  ;;  %v4388_v6 = vld [vmem:[%s4767_s0 + $0x2e8] sm:$0xff]  ;;  %v4378_v9 = vld [vmem:[%s4767_s0 + $0x298] sm:$0xff] }
 0x743   : > { %v1795_v1 = vadd.f32 %v1794_v31, %v1562_v56  ;;  %v1982_v20 = vmax.f32 %v1807_v13, 0.0  ;;  %v4371_v31 = vld [vmem:[%s4767_s0 + $0x260] sm:$0xff]  ;;  %v4377_v13 = vld [vmem:[%s4767_s0 + $0x290] sm:$0xff] }
 0x744   : > { %v1995_v2 = vmax.f32 %v1767_v62, 0.0 }
 0x745   : > { %v1997_v8 = vmax.f32 %v1795_v1, 0.0 }
 0x746   : > { %v2011_v3 = vpack.c.bf16 %v1995_v2, %v1979_v5  ;;  %v4387_v5 = vld [vmem:[%s4767_s0 + $0x2e0] sm:$0xff] }
 0x747   : > { %v2013_v14 = vpack.c.bf16 %v1997_v8, %v1981_v7  ;;  %v1780_v16 = vpop.f32.mrf.mxu3  ;;  %v5179_v7 = vld [vmem:[%s4757_s6 + $0x8] sm:$0xff] }
 0x748   : > { %v1781_v17 = vadd.f32 %v1780_v16, %v1561_v61  ;;  %v1808_v19 = vpop.f32.mrf.mxu2  ;;  %3063 = vmatmul.bf16.vlgmr.msra.gmra.mxu0 %v2011_v3 }
 0x749   : > { %v1809_v21 = vadd.f32 %v1808_v19, %v1563_v63  ;;  %3091 = vmatmul.bf16.vlgmr.msrb.gmra.mxu1 %v2013_v14  ;;  %3167 = vmatpush.bf16.msra.mxu0 %v4366_v4  ;;  %v1820_v22 = vpop.f32.mrf.mxu0  ;;  %v4361_v4 = vld [vmem:[%s4767_s0 + $0x210] sm:$0xff] }
 0x74a   : > { %v1996_v25 = vmax.f32 %v1781_v17, 0.0  ;;  %3195 = vmatpush.bf16.msrb.mxu1 %v4382_v11  ;;  %v1848_v26 = vpop.f32.mrf.mxu1  ;;  %v1821_v40 = vadd.f32 %v1820_v22, %v1564_v33  ;;  %v4370_v17 = vld [vmem:[%s4767_s0 + $0x258] sm:$0xff] }
 0x74b   : > { %v1998_v27 = vmax.f32 %v1809_v21, 0.0  ;;  %v1849_v43 = vadd.f32 %v1848_v26, %v1566_v36  ;;  %v1568_v21 = vperm.slane %v5179_v7, 0  ;;  %v4386_v22 = vld [vmem:[%s4767_s0 + $0x2d8] sm:$0xff]  ;;  %v4376_v26 = vld [vmem:[%s4767_s0 + $0x288] sm:$0xff] }
 0x74c   : > { %v2012_v32 = vpack.c.bf16 %v1996_v25, %v1980_v24  ;;  %v1983_v54 = vmax.f32 %v1821_v40, 0.0  ;;  %v1570_v24 = vperm.slane %v5179_v7, 2  ;;  %v4360_v25 = vld [vmem:[%s4767_s0 + $0x208] sm:$0xff]  ;;  %v1571_v40 = vperm.slane %v5179_v7, 3 }
 0x74d   : > { %v2014_v35 = vpack.c.bf16 %v1998_v27, %v1982_v20  ;;  %3168 = vmatpush.bf16.msra.mxu0 %v4365_v23  ;;  %v1985_v56 = vmax.f32 %v1849_v43, 0.0  ;;  %v4369_v20 = vld [vmem:[%s4767_s0 + $0x250] sm:$0xff]  ;;  %v4368_v43 = vld [vmem:[%s4767_s0 + $0x248] sm:$0xff] }
 0x74e   : > { %3196 = vmatpush.bf16.msrb.mxu1 %v4381_v15  ;;  %3077 = vmatmul.bf16.vlgmr.msrb.gmra.mxu3 %v2012_v32  ;;  %v4385_v32 = vld [vmem:[%s4767_s0 + $0x2d0] sm:$0xff] }
 0x74f   : > { %3105 = vmatmul.bf16.vlgmr.msra.gmra.mxu2 %v2014_v35  ;;  %3181 = vmatpush.bf16.msrb.mxu3 %v4374_v30  ;;  %v1834_v38 = vpop.f32.mrf.mxu3  ;;  %v4359_v35 = vld [vmem:[%s4767_s0 + $0x200] sm:$0xff] }
 0x750   : > { %3209 = vmatpush.bf16.msra.mxu2 %v4390_v34  ;;  %v1862_v41 = vpop.f32.mrf.mxu2  ;;  %v1835_v59 = vadd.f32 %v1834_v38, %v1565_v46  ;;  %v4375_v38 = vld [vmem:[%s4767_s0 + $0x280] sm:$0xff] }
 0x751   : > { %3169 = vmatpush.bf16.msra.mxu0 %v4364_v18  ;;  %v1822_v44 = vpop.f32.mrf.mxu0  ;;  %v1863_v53 = vadd.f32 %v1862_v41, %v1567_v50 }
 0x752   : > { %3197 = vmatpush.bf16.msrb.mxu1 %v4380_v37  ;;  %v1823_v47 = vadd.f32 %v1822_v44, %v1564_v33  ;;  %v1850_v48 = vpop.f32.mrf.mxu1  ;;  %v1984_v10 = vmax.f32 %v1835_v59, 0.0  ;;  %v4383_v59 = vld [vmem:[%s4767_s0 + $0x2c0] sm:$0xff] }
 0x753   : > { %v1851_v51 = vadd.f32 %v1850_v48, %v1566_v36  ;;  %3182 = vmatpush.bf16.msrb.mxu3 %v4373_v39  ;;  %v1986_v14 = vmax.f32 %v1863_v53, 0.0  ;;  %v1569_v36 = vperm.slane %v5179_v7, 1  ;;  %v4398_v39 = vld [vmem:[%s4767_s0 + $0x338] sm:$0xff] }
 0x754   : > { %v1999_v55 = vmax.f32 %v1823_v47, 0.0  ;;  %3210 = vmatpush.bf16.msra.mxu2 %v4389_v42  ;;  %v4414_v42 = vld [vmem:[%s4767_s0 + $0x3b8] sm:$0xff] }
 0x755   : > { %v2001_v57 = vmax.f32 %v1851_v51, 0.0  ;;  %3170 = vmatpush.bf16.msra.mxu0 %v4363_v45  ;;  %v4397_v51 = vld [vmem:[%s4767_s0 + $0x330] sm:$0xff]  ;;  %v4422_v53 = vld [vmem:[%s4767_s0 + $0x3f8] sm:$0xff] }
 0x756   : > { %v2015_v60 = vpack.c.bf16 %v1999_v55, %v1983_v54  ;;  %3198 = vmatpush.bf16.msrb.mxu1 %v4379_v49 }
 0x757   : > { %v2017_v61 = vpack.c.bf16 %v2001_v57, %v1985_v56  ;;  %3183 = vmatpush.bf16.msrb.mxu3 %v4372_v52  ;;  %v1836_v62 = vpop.f32.mrf.mxu3  ;;  %v4367_v56 = vld [vmem:[%s4767_s0 + $0x240] sm:$0xff] }
 0x758   : > { %3211 = vmatpush.bf16.msra.mxu2 %v4388_v6  ;;  %v1837_v63 = vadd.f32 %v1836_v62, %v1565_v46  ;;  %v1864_v1 = vpop.f32.mrf.mxu2  ;;  %3119 = vmatmul.bf16.vlgmr.msrb.gmra.mxu0 %v2015_v60  ;;  %v4384_v46 = vld [vmem:[%s4767_s0 + $0x2c8] sm:$0xff]  ;;  %v4413_v6 = vld [vmem:[%s4767_s0 + $0x3b0] sm:$0xff]  ;;  %v4406_v60 = vld [vmem:[%s4767_s0 + $0x378] sm:$0xff] }
 0x759   : > { %v1865_v2 = vadd.f32 %v1864_v1, %v1567_v50  ;;  %3147 = vmatmul.bf16.vlgmr.msra.gmra.mxu1 %v2017_v61  ;;  %3171 = vmatpush.bf16.msra.mxu0 %v4362_v58  ;;  %v1876_v8 = vpop.f32.mrf.mxu0 }
 0x75a   : > { %v2000_v3 = vmax.f32 %v1837_v63, 0.0  ;;  %3199 = vmatpush.bf16.msrb.mxu1 %v4378_v9  ;;  %v1904_v11 = vpop.f32.mrf.mxu1  ;;  %v1877_v27 = vadd.f32 %v1876_v8, %v1568_v21  ;;  %v4405_v8 = vld [vmem:[%s4767_s0 + $0x370] sm:$0xff] }
 0x75b   : > { %v2002_v16 = vmax.f32 %v1865_v2, 0.0  ;;  %3184 = vmatpush.bf16.msrb.mxu3 %v4371_v31  ;;  %v1905_v33 = vadd.f32 %v1904_v11, %v1570_v24  ;;  %v4396_v31 = vld [vmem:[%s4767_s0 + $0x328] sm:$0xff]  ;;  %v4395_v11 = vld [vmem:[%s4767_s0 + $0x320] sm:$0xff] }
 0x75c   : > { %v2016_v19 = vpack.c.bf16 %v2000_v3, %v1984_v10  ;;  %3212 = vmatpush.bf16.msra.mxu2 %v4387_v5  ;;  %v1987_v44 = vmax.f32 %v1877_v27, 0.0  ;;  %v4412_v5 = vld [vmem:[%s4767_s0 + $0x3a8] sm:$0xff]  ;;  %v4421_v10 = vld [vmem:[%s4767_s0 + $0x3f0] sm:$0xff]  ;;  %v4402_v27 = vld [vmem:[%s4767_s0 + $0x358] sm:$0xff] }
 0x75d   : > { %v2018_v23 = vpack.c.bf16 %v2002_v16, %v1986_v14  ;;  %3172 = vmatpush.bf16.msra.mxu0 %v4361_v4  ;;  %v1989_v47 = vmax.f32 %v1905_v33, 0.0  ;;  %v4411_v14 = vld [vmem:[%s4767_s0 + $0x3a0] sm:$0xff]  ;;  %v4404_v16 = vld [vmem:[%s4767_s0 + $0x368] sm:$0xff]  ;;  %v4418_v33 = vld [vmem:[%s4767_s0 + $0x3d8] sm:$0xff] }
 0x75e   : > { %3200 = vmatpush.bf16.msrb.mxu1 %v4377_v13  ;;  %3133 = vmatmul.bf16.vlgmr.msra.gmra.mxu3 %v2016_v19  ;;  %v4394_v19 = vld [vmem:[%s4767_s0 + $0x318] sm:$0xff] }
 0x75f   : > { %3161 = vmatmul.bf16.vlgmr.msrb.gmra.mxu2 %v2018_v23  ;;  %3185 = vmatpush.bf16.msrb.mxu3 %v4370_v17  ;;  %v1890_v15 = vpop.f32.mrf.mxu3  ;;  %v4420_v17 = vld [vmem:[%s4767_s0 + $0x3e8] sm:$0xff]  ;;  %v4403_v23 = vld [vmem:[%s4767_s0 + $0x360] sm:$0xff] }
 0x760   : > { %3213 = vmatpush.bf16.msra.mxu2 %v4386_v22  ;;  %v1918_v30 = vpop.f32.mrf.mxu2  ;;  %v1891_v49 = vadd.f32 %v1890_v15, %v1569_v36  ;;  %v4409_v15 = vld [vmem:[%s4767_s0 + $0x390] sm:$0xff] }
 0x761   : > { %3173 = vmatpush.bf16.msra.mxu0 %v4360_v25  ;;  %v1878_v34 = vpop.f32.mrf.mxu0  ;;  %v1919_v52 = vadd.f32 %v1918_v30, %v1571_v40  ;;  %v4419_v25 = vld [vmem:[%s4767_s0 + $0x3e0] sm:$0xff]  ;;  %v1572_v30 = vperm.slane %v5179_v7, 4 }
 0x762   : > { %3201 = vmatpush.bf16.msrb.mxu1 %v4376_v26  ;;  %v1879_v18 = vadd.f32 %v1878_v34, %v1568_v21  ;;  %v1906_v37 = vpop.f32.mrf.mxu1  ;;  %v1988_v61 = vmax.f32 %v1891_v49, 0.0  ;;  %v4410_v21 = vld [vmem:[%s4767_s0 + $0x398] sm:$0xff]  ;;  %v4393_v26 = vld [vmem:[%s4767_s0 + $0x310] sm:$0xff]  ;;  %v1574_v34 = vperm.slane %v5179_v7, 6 }
 0x763   : > { %v1907_v41 = vadd.f32 %v1906_v37, %v1570_v24  ;;  %3186 = vmatpush.bf16.msrb.mxu3 %v4369_v20  ;;  %v1990_v63 = vmax.f32 %v1919_v52, 0.0 }
 0x764   : > { %v2003_v45 = vmax.f32 %v1879_v18, 0.0  ;;  %3214 = vmatpush.bf16.msra.mxu2 %v4385_v32  ;;  %v4408_v18 = vld [vmem:[%s4767_s0 + $0x388] sm:$0xff] }
 0x765   : > { %v2005_v48 = vmax.f32 %v1907_v41, 0.0  ;;  %3174 = vmatpush.bf16.msra.mxu0 %v4359_v35  ;;  %v4392_v35 = vld [vmem:[%s4767_s0 + $0x308] sm:$0xff] }
 0x766   : > { %v2019_v50 = vpack.c.bf16 %v2003_v45, %v1987_v44  ;;  %3202 = vmatpush.bf16.msrb.mxu1 %v4375_v38  ;;  %v4401_v38 = vld [vmem:[%s4767_s0 + $0x350] sm:$0xff]  ;;  %v1573_v44 = vperm.slane %v5179_v7, 5 }
 0x767   : > { %v2021_v54 = vpack.c.bf16 %v2005_v48, %v1989_v47  ;;  %3187 = vmatpush.bf16.msrb.mxu3 %v4368_v43  ;;  %v1892_v55 = vpop.f32.mrf.mxu3  ;;  %v4391_v43 = vld [vmem:[%s4767_s0 + $0x300] sm:$0xff]  ;;  %v1575_v48 = vperm.slane %v5179_v7, 7 }
 0x768   : > { %3215 = vmatpush.bf16.msra.mxu2 %v4384_v46  ;;  %v1893_v57 = vadd.f32 %v1892_v55, %v1569_v36  ;;  %v1920_v58 = vpop.f32.mrf.mxu2  ;;  %3175 = vmatmul.bf16.vlgmr.msra.gmra.mxu0 %v2019_v50  ;;  %v4407_v47 = vld [vmem:[%s4767_s0 + $0x380] sm:$0xff]  ;;  %v4400_v50 = vld [vmem:[%s4767_s0 + $0x348] sm:$0xff] }
 0x769   : > { %3223 = vmatpush.bf16.msrb.mxu0 %v4398_v39  ;;  %v1921_v9 = vadd.f32 %v1920_v58, %v1571_v40  ;;  %3203 = vmatmul.bf16.vlgmr.msrb.gmra.mxu1 %v2021_v54  ;;  %v1932_v3 = vpop.f32.mrf.mxu0  ;;  %v4417_v40 = vld [vmem:[%s4767_s0 + $0x3d0] sm:$0xff]  ;;  %v4416_v54 = vld [vmem:[%s4767_s0 + $0x3c8] sm:$0xff] }
 0x76a   : > { %3251 = vmatpush.bf16.msra.mxu1 %v4414_v42  ;;  %v2004_v62 = vmax.f32 %v1893_v57, 0.0  ;;  %v1960_v13 = vpop.f32.mrf.mxu1  ;;  %v1933_v39 = vadd.f32 %v1932_v3, %v1572_v30 }
 0x76b   : > { %v2006_v1 = vmax.f32 %v1921_v9, 0.0  ;;  %3188 = vmatpush.bf16.msrb.mxu3 %v4367_v56  ;;  %v1961_v41 = vadd.f32 %v1960_v13, %v1574_v34  ;;  %v4415_v9 = vld [vmem:[%s4767_s0 + $0x3c0] sm:$0xff] }
 0x76c   : > { %v2020_v2 = vpack.c.bf16 %v2004_v62, %v1988_v61  ;;  %3216 = vmatpush.bf16.msra.mxu2 %v4383_v59  ;;  %v4493_v13 = vld [vmem:[%s682_s29] ss:$0 sm:$0xff]  ;;  %s5311_s29 = sld [smem:[#allocation11_spill]] (!%p4250_p5) }
 0x76d   : > { %3224 = vmatpush.bf16.msrb.mxu0 %v4397_v51  ;;  %v2022_v4 = vpack.c.bf16 %v2006_v1, %v1990_v63  ;;  %v1991_v51 = vmax.f32 %v1933_v39, 0.0  ;;  %v1993_v55 = vmax.f32 %v1961_v41, 0.0 }
 0x76e   : > { %3252 = vmatpush.bf16.msra.mxu1 %v4413_v6  ;;  %3189 = vmatmul.bf16.vlgmr.msrb.gmra.mxu3 %v2020_v2 }
 0x76f   : > { %3237 = vmatpush.bf16.msra.mxu3 %v4406_v60  ;;  %3217 = vmatmul.bf16.vlgmr.msra.gmra.mxu2 %v2022_v4  ;;  %v1946_v22 = vpop.f32.mrf.mxu3  ;;  %v4399_v60 = vld [vmem:[%s4767_s0 + $0x340] sm:$0xff] }
 0x770   : > { %3265 = vmatpush.bf16.msrb.mxu2 %v4422_v53  ;;  %v1974_v24 = vpop.f32.mrf.mxu2  ;;  %v1947_v56 = vadd.f32 %v1946_v22, %v1573_v44 }
 0x771   : > { %3225 = vmatpush.bf16.msrb.mxu0 %v4396_v31  ;;  %v1934_v20 = vpop.f32.mrf.mxu0  ;;  %v1975_v58 = vadd.f32 %v1974_v24, %v1575_v48 }
 0x772   : > { %3253 = vmatpush.bf16.msra.mxu1 %v4412_v5  ;;  %v1962_v32 = vpop.f32.mrf.mxu1  ;;  %v1935_v36 = vadd.f32 %v1934_v20, %v1572_v30  ;;  %v1992_v61 = vmax.f32 %v1947_v56, 0.0 }
 0x773   : > { %3238 = vmatpush.bf16.msra.mxu3 %v4405_v8  ;;  %v1963_v37 = vadd.f32 %v1962_v32, %v1574_v34  ;;  %v1994_v62 = vmax.f32 %v1975_v58, 0.0 }
 0x774   : > { %3266 = vmatpush.bf16.msrb.mxu2 %v4421_v10  ;;  %v2007_v45 = vmax.f32 %v1935_v36, 0.0 }
 0x775   : > { %3226 = vmatpush.bf16.msrb.mxu0 %v4395_v11  ;;  %v2009_v49 = vmax.f32 %v1963_v37, 0.0 }
 0x776   : > { %3254 = vmatpush.bf16.msra.mxu1 %v4411_v14  ;;  %v2023_v57 = vpack.c.bf16 %v2007_v45, %v1991_v51 }
 0x777   : > { %3239 = vmatpush.bf16.msra.mxu3 %v4404_v16  ;;  %v1948_v42 = vpop.f32.mrf.mxu3  ;;  %v2025_v59 = vpack.c.bf16 %v2009_v49, %v1993_v55 }
 0x778   : > { %3267 = vmatpush.bf16.msrb.mxu2 %v4420_v17  ;;  %v1976_v46 = vpop.f32.mrf.mxu2  ;;  %v1949_v52 = vadd.f32 %v1948_v42, %v1573_v44 }
 0x779   : > { %3227 = vmatpush.bf16.msrb.mxu0 %v4394_v19  ;;  %v1977_v6 = vadd.f32 %v1976_v46, %v1575_v48 }
 0x77a   : > { %3255 = vmatpush.bf16.msra.mxu1 %v4410_v21  ;;  %v2008_v7 = vmax.f32 %v1949_v52, 0.0 }
 0x77b   : > { %3240 = vmatpush.bf16.msra.mxu3 %v4403_v23  ;;  %v2010_v53 = vmax.f32 %v1977_v6, 0.0 }
 0x77c   : > { %3268 = vmatpush.bf16.msrb.mxu2 %v4419_v25  ;;  %v2024_v31 = vpack.c.bf16 %v2008_v7, %v1992_v61 }
 0x77d   : > { %3228 = vmatpush.bf16.msrb.mxu0 %v4393_v26  ;;  %v2026_v63 = vpack.c.bf16 %v2010_v53, %v1994_v62 }
 0x77e   : > { %3256 = vmatpush.bf16.msra.mxu1 %v4409_v15 }
 0x77f   : > { %3241 = vmatpush.bf16.msra.mxu3 %v4402_v27 }
 0x780   : > { %3269 = vmatpush.bf16.msrb.mxu2 %v4418_v33 }
 0x781   : > { %3229 = vmatpush.bf16.msrb.mxu0 %v4392_v35 }
 0x782   : > { %3257 = vmatpush.bf16.msra.mxu1 %v4408_v18 }
 0x783   : > { %3242 = vmatpush.bf16.msra.mxu3 %v4401_v38 }
 0x784   : > { %3270 = vmatpush.bf16.msrb.mxu2 %v4417_v40 }
 0x785   : > { %3230 = vmatpush.bf16.msrb.mxu0 %v4391_v43 }
 0x786   : > { %3258 = vmatpush.bf16.msra.mxu1 %v4407_v47 }
 0x787   : > { %3243 = vmatpush.bf16.msra.mxu3 %v4400_v50 }
 0x788   : > { %3271 = vmatpush.bf16.msrb.mxu2 %v4416_v54  ;;  %3231 = vmatmul.bf16.vlgmr.msrb.gmra.mxu0 %v2023_v57 }
 0x789   : > { %3259 = vmatmul.bf16.vlgmr.msra.gmra.mxu1 %v2025_v59 }
 0x78b   : > { %3244 = vmatpush.bf16.msra.mxu3 %v4399_v60 }
 0x78c   : > { %3272 = vmatpush.bf16.msrb.mxu2 %v4415_v9 }
 0x78e   : > { %3245 = vmatmul.bf16.vlgmr.msra.gmra.mxu3 %v2024_v31 }
 0x78f   : > { %3273 = vmatmul.bf16.vlgmr.msrb.gmra.mxu2 %v2026_v63 }
 0x7c5   : > { %v3064_v1 = vpop.f32.mrf.mxu0 }
 0x7c6   : > { %v3092_v5 = vpop.f32.mrf.mxu1  ;;  %v3065_v16 = vadd.f32 %v4493_v13, %v3064_v1 }
 0x7cd   : > { %v3066_v4 = vpop.f32.mrf.mxu0 }
 0x7ce   : > { %v3094_v10 = vpop.f32.mrf.mxu1  ;;  %v3067_v25 = vadd.f32 %v4493_v13, %v3066_v4 }
 0x7d1   : > { %v3078_v2 = vpop.f32.mrf.mxu3 }
 0x7d2   : > { %v3106_v8 = vpop.f32.mrf.mxu2  ;;  %v3079_v17 = vadd.f32 %v3078_v2, %v3065_v16 }
 0x7d4   : > { %v3093_v23 = vadd.f32 %v3092_v5, %v3079_v17 }
 0x7d5   : > { %v3120_v14 = vpop.f32.mrf.mxu0 }
 0x7d6   : > { %v3148_v19 = vpop.f32.mrf.mxu1  ;;  %v3107_v26 = vadd.f32 %v3106_v8, %v3093_v23 }
 0x7d8   : > { %v3121_v30 = vadd.f32 %v3120_v14, %v3107_v26 }
 0x7d9   : > { %v3080_v3 = vpop.f32.mrf.mxu3 }
 0x7da   : > { %v3108_v11 = vpop.f32.mrf.mxu2  ;;  %v3081_v15 = vadd.f32 %v3080_v3, %v3067_v25 }
 0x7dc   : > { %v3095_v32 = vadd.f32 %v3094_v10, %v3081_v15 }
 0x7dd   : > { %v3122_v24 = vpop.f32.mrf.mxu0 }
 0x7de   : > { %v3150_v20 = vpop.f32.mrf.mxu1  ;;  %v3109_v36 = vadd.f32 %v3108_v11, %v3095_v32 }
 0x7e0   : > { %v3123_v37 = vadd.f32 %v3122_v24, %v3109_v36 }
 0x7e1   : > { %v3134_v21 = vpop.f32.mrf.mxu3 }
 0x7e2   : > { %v3162_v22 = vpop.f32.mrf.mxu2  ;;  %v3135_v34 = vadd.f32 %v3134_v21, %v3121_v30 }
 0x7e4   : > { %v3149_v18 = vadd.f32 %v3148_v19, %v3135_v34 }
 0x7e5   : > { %v3176_v35 = vpop.f32.mrf.mxu0 }
 0x7e6   : > { %v3204_v38 = vpop.f32.mrf.mxu1  ;;  %v3163_v40 = vadd.f32 %v3162_v22, %v3149_v18 }
 0x7e8   : > { %v3177_v44 = vadd.f32 %v3176_v35, %v3163_v40 }
 0x7e9   : > { %v3136_v27 = vpop.f32.mrf.mxu3 }
 0x7ea   : > { %v3164_v33 = vpop.f32.mrf.mxu2  ;;  %v3137_v41 = vadd.f32 %v3136_v27, %v3123_v37 }
 0x7ec   : > { %v3151_v45 = vadd.f32 %v3150_v20, %v3137_v41 }
 0x7ed   : > { %v3178_v43 = vpop.f32.mrf.mxu0 }
 0x7ee   : > { %v3165_v47 = vadd.f32 %v3164_v33, %v3151_v45  ;;  %v3206_v48 = vpop.f32.mrf.mxu1 }
 0x7f0   : > { %v3179_v54 = vadd.f32 %v3178_v43, %v3165_v47 }
 0x7f1   : > { %v3190_v39 = vpop.f32.mrf.mxu3 }
 0x7f2   : > { %v3218_v42 = vpop.f32.mrf.mxu2  ;;  %v3191_v46 = vadd.f32 %v3190_v39, %v3177_v44 }
 0x7f4   : > { %v3205_v50 = vadd.f32 %v3204_v38, %v3191_v46 }
 0x7f6   : > { %v3219_v55 = vadd.f32 %v3218_v42, %v3205_v50 }
 0x7f9   : > { %v3192_v49 = vpop.f32.mrf.mxu3 }
 0x7fa   : > { %v3220_v51 = vpop.f32.mrf.mxu2  ;;  %v3193_v6 = vadd.f32 %v3192_v49, %v3179_v54 }
 0x7fc   : > { %v3207_v59 = vadd.f32 %v3206_v48, %v3193_v6 }
 0x7fe   : > { %v3221_v61 = vadd.f32 %v3220_v51, %v3207_v59 }
 0x805   : > { %v3232_v52 = vpop.f32.mrf.mxu0 }
 0x806   : > { %v3233_v56 = vadd.f32 %v3232_v52, %v3219_v55  ;;  %v3260_v57 = vpop.f32.mrf.mxu1 }
 0x80d   : > { %v3234_v53 = vpop.f32.mrf.mxu0 }
 0x80e   : > { %v3235_v31 = vadd.f32 %v3234_v53, %v3221_v61  ;;  %v3262_v2 = vpop.f32.mrf.mxu1 }
 0x811   : > { %v3246_v58 = vpop.f32.mrf.mxu3 }
 0x812   : > { %v3247_v60 = vadd.f32 %v3246_v58, %v3233_v56  ;;  %v3274_v7 = vpop.f32.mrf.mxu2 }
 0x814   : > { %v3261_v9 = vadd.f32 %v3260_v57, %v3247_v60 }
 0x816   : > { %v3275_v62 = vadd.f32 %v3274_v7, %v3261_v9 }
 0x818   : > { %v3279_v63 = vadd.f32 %v3275_v62, %v4930_v28 }
 0x819   : > { %v3248_v1 = vpop.f32.mrf.mxu3 }
 0x81a   : > { %3281 = vst.msk [vmem:[#allocation2] sm:$0xff] %vm699_vm1, %v3279_v63  ;;  %v3249_v5 = vadd.f32 %v3248_v1, %v3235_v31  ;;  %v3276_v4 = vpop.f32.mrf.mxu2 }
 0x81c   : > { %v3263_v8 = vadd.f32 %v3262_v2, %v3249_v5 }
 0x81e   : > { %v3277_v10 = vadd.f32 %v3276_v4, %v3263_v8  ;;  %3286 = sbr.rel (%p4250_p5) target bundleno = 2378 (0x94a), region = 92 }
 0x820   : > { %v3280_v3 = vadd.f32 %v3277_v10, %v4935_v0 }
 0x822   : > { %3282 = vst.msk [vmem:[#allocation2 + $0x8] sm:$0xff] %vm699_vm1, %v3280_v3 }
 0x823   : > { %v3289_v11 = vsel %vm699_vm1, %v3279_v63, 0.0  ;;  %v3292_v28 = vsel %vm699_vm1, %v3280_v3, 0.0  ;;  %v4546_v54 = vld [vmem:[%s5311_s29] ss:$0 sm:$0xff] }
 0x824   : > { %3290 = vadd.xlane.f32.xlu0 %v3289_v11  ;;  %v4547_v7 = vld [vmem:[%s5312_s27] ss:$0 sm:$0xff] }
 0x82c   : > { %3293 = vadd.xlane.f32.xlu0 %v3292_v28 }
 0x897   : > { %v3291_v13 = vpop.xlane.xlu0 %3290 }
 0x898   : > { %v3295_v14 = vmul.f32 %v3291_v13, %v4784_v12 }
 0x89a   : > { %v3297_v16 = vsub.f32 %v3279_v63, %v3295_v14 }
 0x89c   : > { %v3299_v17 = vmul.f32 %v3297_v16, %v3297_v16  ;;  %v3312_v59 = vmul.f32 %v4546_v54, %v3297_v16 }
 0x89e   : > { %v3301_v19 = vsel %vm699_vm1, %v3299_v17, 0.0 }
 0x89f   : > { %3302 = vadd.xlane.f32.xlu1 %v3301_v19  ;;  %v3294_v0 = vpop.xlane.xlu0 %3293 }
 0x8a0   : > { %v3296_v21 = vmul.f32 %v3294_v0, %v4784_v12 }
 0x8a2   : > { %v5250_v22 = vsub.f32 %v3280_v3, %v3296_v21 }
 0x8a4   : > { %v3300_v23 = vmul.f32 %v5250_v22, %v5250_v22  ;;  %v3313_v4 = vmul.f32 %v4546_v54, %v5250_v22 }
 0x8a6   : > { %v3304_v24 = vsel %vm699_vm1, %v3300_v23, 0.0 }
 0x8a7   : > { %3305 = vadd.xlane.f32.xlu1 %v3304_v24 }
 0x912   : > { %v3303_v25 = vpop.xlane.xlu1 %3302 }
 0x913   : > { %v3307_v26 = vmul.f32 %v3303_v25, %v4800_v29 }
 0x915   : > { %4548 = vrsqrt.f32 %v3307_v26  ;;  %vm3321_vm0 = vcmp.eq.f32.partialorder %v3307_v26, inf  ;;  %v3324_v38 = vand.u32 2147483648, %v3307_v26  ;;  %vm3323_vm2 = vcmp.eq.f32.partialorder %v3307_v26, 0.0 }
 0x91a   : > { %v3306_v15 = vpop.xlane.xlu1 %3305 }
 0x91b   : > { %v4549_v20 = vpop.eup %4548  ;;  %v3308_v27 = vmul.f32 %v3306_v15, %v4800_v29 }
 0x91c   : > { %v3315_v30 = vmul.f32 %v4549_v20, %v3307_v26 }
 0x91d   : > { %4550 = vrsqrt.f32 %v3308_v27  ;;  %vm3333_vm3 = vcmp.eq.f32.partialorder %v3308_v27, inf  ;;  %v3336_v45 = vand.u32 2147483648, %v3308_v27  ;;  %vm3335_vm4 = vcmp.eq.f32.partialorder %v3308_v27, 0.0 }
 0x91e   : > { %v3316_v32 = vmul.f32 %v4549_v20, %v3315_v30 }
 0x920   : > { %v3317_v12 = vmul.f32 0.5, %v3316_v32 }
 0x922   : > { %v3318_v33 = vsub.f32 1.5, %v3317_v12 }
 0x923   : > { %v4551_v34 = vpop.eup %4550 }
 0x924   : > { %v3319_v35 = vmul.f32 %v4549_v20, %v3318_v33  ;;  %v3327_v36 = vmul.f32 %v4551_v34, %v3308_v27 }
 0x926   : > { %v3320_v18 = vmul.f32 %v3319_v35, %v3307_v26  ;;  %v3328_v37 = vmul.f32 %v4551_v34, %v3327_v36 }
 0x928   : > { %v3322_v39 = vsel %vm3321_vm0, %v3307_v26, %v3320_v18  ;;  %v3329_v40 = vmul.f32 0.5, %v3328_v37 }
 0x929   : > { %v3325_v41 = vsel %vm3323_vm2, %v3324_v38, %v3322_v39 }
 0x92a   : > { %v3338_v42 = vadd.f32 1e-06, %v3325_v41  ;;  %v3330_v43 = vsub.f32 1.5, %v3329_v40 }
 0x92c   : > { %4552 = vrcp.f32 %v3338_v42  ;;  %v3331_v29 = vmul.f32 %v4551_v34, %v3330_v43  ;;  %v3351_v52 = vand.u32 2147483648, %v3338_v42  ;;  %v3349_v6 = vand.u32 2147483647, %v3338_v42 }
 0x92d   : > { %vm3345_vm6 = vweird.f32 %v3338_v42 }
 0x92e   : > { %v3332_v44 = vmul.f32 %v3331_v29, %v3308_v27  ;;  %v3352_v57 = vor.u32 1.1754944e-38, %v3351_v52  ;;  %vm3350_vm8 = vcmp.eq.f32.partialorder %v3349_v6, 8.507059e+37 }
 0x930   : > { %v3334_v46 = vsel %vm3333_vm3, %v3308_v27, %v3332_v44 }
 0x931   : > { %v3337_v48 = vsel %vm3335_vm4, %v3336_v45, %v3334_v46 }
 0x932   : > { %v4553_v47 = vpop.eup %4552  ;;  %v3339_v50 = vadd.f32 1e-06, %v3337_v48 }
 0x933   : > { %v3341_v49 = vmul.f32 %v4553_v47, %v3338_v42  ;;  %vm3346_vm5 = vweird.f32 %v4553_v47 }
 0x934   : > { %4554 = vrcp.f32 %v3339_v50  ;;  %vm3347_vm7 = vmor %vm3345_vm6, %vm3346_vm5  ;;  %v3366_v63 = vand.u32 2147483648, %v3339_v50  ;;  %v3364_v5 = vand.u32 2147483647, %v3339_v50  ;;  %vm3360_vm10 = vweird.f32 %v3339_v50 }
 0x935   : > { %v3342_v51 = vsub.f32 1.0, %v3341_v49 }
 0x936   : > { %v3367_v8 = vor.u32 1.1754944e-38, %v3366_v63  ;;  %vm3365_vm12 = vcmp.eq.f32.partialorder %v3364_v5, 8.507059e+37 }
 0x937   : > { %v3343_v55 = vmul.f32 %v4553_v47, %v3342_v51 }
 0x939   : > { %v3344_v56 = vadd.f32 %v4553_v47, %v3343_v55 }
 0x93a   : > { %v4555_v58 = vpop.eup %4554 }
 0x93b   : > { %v3348_v60 = vsel %vm3347_vm7, %v4553_v47, %v3344_v56  ;;  %v3356_v53 = vmul.f32 %v4555_v58, %v3339_v50  ;;  %vm3361_vm9 = vweird.f32 %v4555_v58 }
 0x93c   : > { %v3353_v9 = vsel %vm3350_vm8, %v3352_v57, %v3348_v60  ;;  %vm3362_vm11 = vmor %vm3360_vm10, %vm3361_vm9 }
 0x93d   : > { %v3354_v61 = vmul.f32 %v3353_v9, %v3312_v59  ;;  %v3357_v62 = vsub.f32 1.0, %v3356_v53 }
 0x93f   : > { %v3373_v31 = vadd.f32 %v4547_v7, %v3354_v61  ;;  %v3358_v1 = vmul.f32 %v4555_v58, %v3357_v62 }
 0x941   : > { %3375 = vst.msk [vmem:[#allocation3] sm:$0xff] %vm699_vm1, %v3373_v31  ;;  %v3359_v2 = vadd.f32 %v4555_v58, %v3358_v1 }
 0x943   : > { %v3363_v10 = vsel %vm3362_vm11, %v4555_v58, %v3359_v2 }
 0x944   : > { %v3368_v3 = vsel %vm3365_vm12, %v3367_v8, %v3363_v10 }
 0x945   : > { %v3369_v11 = vmul.f32 %v3368_v3, %v3313_v4 }
 0x947   : > { %v3374_v28 = vadd.f32 %v4547_v7, %v3369_v11 }
 0x949   : > { %3376 = vst.msk [vmem:[#allocation3 + $0x8] sm:$0xff] %vm699_vm1, %v3374_v28 }
 0x94a PF: > { %p4427_p6 = scmp.eq.s32.totalorder %s4705_s22, 5  ;;  %s4612_s21 = smov [#allocation3]  }
 0x94b   : > { %s3382_s16 = sshll.u32 %s4612_s21, 4  ;;  %s5313_s28 = sld [smem:[#allocation13_spill]]  ;;  %s3383_s16 = int_to_ptr.vmem [resolvable:$true] %s3382_s16 }
 0x94c   : > { %s4613_s17 = smov 128  }
 0x951   : > { %s3384_s4 = sshll.u32 %s5313_s28, 4  ;;  %s3385_s4 = int_to_ptr.hbm [resolvable:$true] %s3384_s4 }
 0x952   : > { %4424 = dma.vmem_to_hbm [thread:$0]  (%p4427_p6), %s3383_s16, 256, %s3385_s4, [#allocation4], %s4613_s17, %s4613_s17, %s4609_s24  }
 0x953   : > { %4589 = dma.done.wait (%p4427_p6), [#allocation4], 256  }
 0x954   : > { %4591 = vsyncadd (%p4427_p6), [#allocation4], 4294967040 }
 0x955 PF: > { %s5314_s30 = sld [smem:[#allocation6_spill]] }
 0x95b   : > { %s27_s21 = sadd.s32 1, %s5314_s30  }
 0x95c   : > { %p24_p7 = scmp.ge.s32.totalorder %s27_s21, 8  }
 0x95e   :  { %26 = sbr.rel (!%p24_p7) target bundleno = 9 (0x9), region = 152 }
 0x963   :  { %3401 = vsyncpa [#allocation4], 1 }
 0x964   :  { %3403 = vsyncpa [#allocation4 + $0x1], 1 }

</bundles_post_ra>
